<compile_context>
chip_gen: v5e
topology: v5e:2x2
jax: 0.10.0
libtpu: 0.0.40
codegen_flags: <defaults>
</compile_context>

<pallas_src>
import functools

import jax
import jax.numpy as jnp
from jax import lax
from jax.experimental import pallas as pl
from jax.experimental.pallas import tpu as pltpu

LN_EPS = 1e-12

# Tile preferences (largest first).  Columns are kept 128-aligned (v5e MXU) and
# prefer 256/384/512 multiples (v6e/v7x 256x256 MXU); rows amortize per-step
# overhead.  _pick_tile falls back to the full dim for small/odd shapes.
_ROW_PREFS = (512, 256, 128, 64, 32, 16, 8)
_COL_PREFS = (512, 384, 256, 128)


def _pick_tile(dim, prefs):
    for p in prefs:
        if p <= dim and dim % p == 0:
            return p
    return dim


# ----------------------------- Pallas kernels ------------------------------

def _linear_kernel(x_ref, w_ref, b_ref, o_ref, acc_ref, *, gelu):
    """Tiled matmul with f32 accumulator; bias (+ optional GELU) epilogue."""
    k = pl.program_id(2)

    @pl.when(k == 0)
    def _():
        acc_ref[...] = jnp.zeros_like(acc_ref)

    acc_ref[...] += jnp.dot(x_ref[...], w_ref[...],
                            preferred_element_type=jnp.float32)

    @pl.when(k == pl.num_programs(2) - 1)
    def _():
        h = acc_ref[...] + b_ref[...]
        if gelu:
            # TODO(synk): HF BERT uses exact erf-based GELU; tanh approximation here.
            h = 0.5 * h * (1.0 + jnp.tanh(
                0.7978845608028654 * (h + 0.044715 * h * h * h)))
        o_ref[...] = h.astype(o_ref.dtype)


def _linear_add_ln_kernel(x_ref, w_ref, b_ref, r_ref, g_ref, beta_ref,
                          o_ref, acc_ref, *, eps):
    """Tiled matmul with fused bias + residual add + LayerNorm epilogue.

    Output tile spans the full hidden dim so LN stats are computed in-kernel.
    """
    k = pl.program_id(1)

    @pl.when(k == 0)
    def _():
        acc_ref[...] = jnp.zeros_like(acc_ref)

    acc_ref[...] += jnp.dot(x_ref[...], w_ref[...],
                            preferred_element_type=jnp.float32)

    @pl.when(k == pl.num_programs(1) - 1)
    def _():
        y = acc_ref[...] + b_ref[...] + r_ref[...].astype(jnp.float32)
        mu = jnp.mean(y, axis=-1, keepdims=True)
        var = jnp.mean((y - mu) ** 2, axis=-1, keepdims=True)
        o_ref[...] = ((y - mu) * lax.rsqrt(var + eps)
                      * g_ref[...] + beta_ref[...]).astype(o_ref.dtype)


def _ln_kernel(x_ref, g_ref, b_ref, o_ref, *, eps):
    x = x_ref[...].astype(jnp.float32)
    mu = jnp.mean(x, axis=-1, keepdims=True)
    var = jnp.mean((x - mu) ** 2, axis=-1, keepdims=True)
    o_ref[...] = ((x - mu) * lax.rsqrt(var + eps)
                  * g_ref[...] + b_ref[...]).astype(o_ref.dtype)


def _attention_kernel(qkv_ref, bias_ref, o_ref, *, n_heads, d_head, scale):
    """Per-batch attention over a fused [S, 3H] QKV block.

    Head columns are sliced in-kernel (no wrapper transposes); scores use
    dot_general contracting last dims (no K transpose); softmax 1/sum is folded
    into the context via pl.reciprocal; one lane-dense [S, H] store.
    """
    # TODO(synk): for long sequences (S >= ~1024), switch to flash-style KV tiling
    # with an online-softmax accumulator instead of materializing [S, S].
    hidden = n_heads * d_head
    bias = bias_ref[0]                                      # [1, S] f32
    parts = []
    for h in range(n_heads):
        lo = h * d_head
        q = qkv_ref[0, :, lo:lo + d_head]                   # [S, dh] bf16
        k = qkv_ref[0, :, hidden + lo:hidden + lo + d_head]
        v = qkv_ref[0, :, 2 * hidden + lo:2 * hidden + lo + d_head]
        s = lax.dot_general(q, k, (((1,), (1,)), ((), ())),
                            preferred_element_type=jnp.float32)
        s = s * scale + bias                                # [S, S] f32
        m = jnp.max(s, axis=-1, keepdims=True)
        p = jnp.exp(s - m)
        denom = jnp.sum(p, axis=-1, keepdims=True)
        ctx = jnp.dot(p.astype(v.dtype), v, preferred_element_type=jnp.float32)
        parts.append(ctx * pl.reciprocal(denom, approx=True))
    o_ref[0] = jnp.concatenate(parts, axis=-1).astype(o_ref.dtype)


def _pool_head_kernel(h_ref, w_ref, b_ref, o_ref, *, inv_s):
    # mean over sequence then dot with a [H] vector as a VPU reduction
    # (avoids a 1-lane-wide MXU matmul).
    h = h_ref[...].astype(jnp.float32)                      # [B, S, H]
    pooled = jnp.sum(h, axis=1) * inv_s                     # [B, H]
    o_ref[...] = jnp.sum(pooled * w_ref[...], axis=-1, keepdims=True) + b_ref[...]


# ------------------------------ wrappers ------------------------------------

def pallas_linear(x, w, b, gelu=False):
    M, K = x.shape
    _, N = w.shape
    tm = _pick_tile(M, _ROW_PREFS)
    tn = _pick_tile(N, _COL_PREFS)
    tk = _pick_tile(K, _COL_PREFS)
    grid = (M // tm, N // tn, K // tk)
    return pl.pallas_call(
        functools.partial(_linear_kernel, gelu=gelu),
        out_shape=jax.ShapeDtypeStruct((M, N), jnp.bfloat16),
        grid_spec=pltpu.PrefetchScalarGridSpec(
            num_scalar_prefetch=0, grid=grid,
            in_specs=[pl.BlockSpec((tm, tk), lambda i, j, k: (i, k)),
                      pl.BlockSpec((tk, tn), lambda i, j, k: (k, j)),
                      pl.BlockSpec((1, tn), lambda i, j, k: (0, j))],
            out_specs=pl.BlockSpec((tm, tn), lambda i, j, k: (i, j)),
            scratch_shapes=[pltpu.VMEM((tm, tn), jnp.float32)]),
        compiler_params=pltpu.CompilerParams(
            dimension_semantics=("parallel", "parallel", "arbitrary")),
    )(x, w, b.reshape(1, N))


def pallas_linear_add_ln(x, w, b, res, g, beta):
    M, K = x.shape
    _, N = w.shape
    tm = _pick_tile(M, _ROW_PREFS)
    tk = _pick_tile(K, _COL_PREFS)
    grid = (M // tm, K // tk)
    return pl.pallas_call(
        functools.partial(_linear_add_ln_kernel, eps=LN_EPS),
        out_shape=jax.ShapeDtypeStruct((M, N), jnp.bfloat16),
        grid_spec=pltpu.PrefetchScalarGridSpec(
            num_scalar_prefetch=0, grid=grid,
            in_specs=[pl.BlockSpec((tm, tk), lambda i, k: (i, k)),
                      pl.BlockSpec((tk, N), lambda i, k: (k, 0)),
                      pl.BlockSpec((1, N), lambda i, k: (0, 0)),
                      pl.BlockSpec((tm, N), lambda i, k: (i, 0)),
                      pl.BlockSpec((1, N), lambda i, k: (0, 0)),
                      pl.BlockSpec((1, N), lambda i, k: (0, 0))],
            out_specs=pl.BlockSpec((tm, N), lambda i, k: (i, 0)),
            scratch_shapes=[pltpu.VMEM((tm, N), jnp.float32)]),
        compiler_params=pltpu.CompilerParams(
            dimension_semantics=("parallel", "arbitrary")),
    )(x, w, b.reshape(1, N), res, g.reshape(1, N), beta.reshape(1, N))


def pallas_layernorm(x, g, b):
    M, H = x.shape
    tm = _pick_tile(M, _ROW_PREFS)
    return pl.pallas_call(
        functools.partial(_ln_kernel, eps=LN_EPS),
        grid=(M // tm,),
        in_specs=[pl.BlockSpec((tm, H), lambda i: (i, 0)),
                  pl.BlockSpec((1, H), lambda i: (0, 0)),
                  pl.BlockSpec((1, H), lambda i: (0, 0))],
        out_specs=pl.BlockSpec((tm, H), lambda i: (i, 0)),
        out_shape=jax.ShapeDtypeStruct((M, H), jnp.bfloat16),
        compiler_params=pltpu.CompilerParams(dimension_semantics=("parallel",)),
    )(x, g.reshape(1, H), b.reshape(1, H))


def pallas_attention(qkv, bias, n_heads, d_head):
    B, S, H3 = qkv.shape
    H = H3 // 3
    scale = 1.0 / (d_head ** 0.5)
    return pl.pallas_call(
        functools.partial(_attention_kernel,
                          n_heads=n_heads, d_head=d_head, scale=scale),
        grid=(B,),
        in_specs=[pl.BlockSpec((1, S, H3), lambda b: (b, 0, 0)),
                  pl.BlockSpec((1, 1, S), lambda b: (b, 0, 0))],
        out_specs=pl.BlockSpec((1, S, H), lambda b: (b, 0, 0)),
        out_shape=jax.ShapeDtypeStruct((B, S, H), jnp.bfloat16),
        compiler_params=pltpu.CompilerParams(dimension_semantics=("parallel",)),
    )(qkv, bias)


def pallas_pool_head(hidden, w, b, seq_len):
    B, _, H = hidden.shape
    return pl.pallas_call(
        functools.partial(_pool_head_kernel, inv_s=1.0 / float(seq_len)),
        out_shape=jax.ShapeDtypeStruct((B, 1), jnp.float32),
    )(hidden, w.reshape(1, H), b.reshape(1, 1))


# ------------------------------ parameters ----------------------------------

def init_bert_params(key, cfg):
    H, I = cfg["hidden"], cfg["intermediate"]
    V, P, T, L = cfg["vocab"], cfg["max_pos"], cfg["type_vocab"], cfg["layers"]
    ks = iter(jax.random.split(key, 3 + 4 * L + 1))

    def dense(k, din, dout):
        return (jax.random.normal(k, (din, dout), jnp.float32) * 0.02
                ).astype(jnp.bfloat16)

    params = {
        "word_emb": jax.random.normal(next(ks), (V, H), jnp.float32) * 0.02,
        "pos_emb": jax.random.normal(next(ks), (P, H), jnp.float32) * 0.02,
        "type_emb": jax.random.normal(next(ks), (T, H), jnp.float32) * 0.02,
        "emb_ln_g": jnp.ones((H,), jnp.float32),
        "emb_ln_b": jnp.zeros((H,), jnp.float32),
        "layers": [],
    }
    for _ in range(L):
        params["layers"].append({
            # fused QKV projection: [H, 3H]
            "wqkv": dense(next(ks), H, 3 * H),
            "bqkv": jnp.zeros((3 * H,), jnp.float32),
            "wo": dense(next(ks), H, H), "bo": jnp.zeros((H,), jnp.float32),
            "ln1_g": jnp.ones((H,), jnp.float32),
            "ln1_b": jnp.zeros((H,), jnp.float32),
            "wi": dense(next(ks), H, I), "bi": jnp.zeros((I,), jnp.float32),
            "wo2": dense(next(ks), I, H), "bo2": jnp.zeros((H,), jnp.float32),
            "ln2_g": jnp.ones((H,), jnp.float32),
            "ln2_b": jnp.zeros((H,), jnp.float32),
        })
    params["cls_w"] = (jax.random.normal(next(ks), (H,), jnp.float32) * 0.02)
    params["cls_b"] = jnp.zeros((1,), jnp.float32)
    return params


# ------------------------------ forward pass ---------------------------------

def bert_class_forward(params, ids, mask, *, cfg):
    B, S = ids.shape
    H, NH = cfg["hidden"], cfg["heads"]
    DH = H // NH
    M = B * S

    # Embeddings (data-dependent gather -> plain JAX glue), LN in a Pallas kernel.
    # TODO(synk): token_type_ids hardcoded to 0 (matches BERTClass call signature).
    pos = jnp.arange(S)
    emb = (params["word_emb"][ids]
           + params["pos_emb"][pos][None, :, :]
           + params["type_emb"][0][None, None, :])
    x = pallas_layernorm(emb.reshape(M, H),
                         params["emb_ln_g"], params["emb_ln_b"])        # bf16 [M,H]

    # Extended attention mask bias: (1 - mask) * -10000, broadcast over heads/query.
    bias = ((1.0 - mask.astype(jnp.float32)) * -10000.0).reshape(B, 1, S)

    for lyr in params["layers"]:
        qkv = pallas_linear(x, lyr["wqkv"], lyr["bqkv"])                # [M, 3H]
        ctx = pallas_attention(qkv.reshape(B, S, 3 * H), bias, NH, DH)  # [B, S, H]
        x = pallas_linear_add_ln(ctx.reshape(M, H), lyr["wo"], lyr["bo"],
                                 x, lyr["ln1_g"], lyr["ln1_b"])
        inter = pallas_linear(x, lyr["wi"], lyr["bi"], gelu=True)       # [M, I]
        x = pallas_linear_add_ln(inter, lyr["wo2"], lyr["bo2"],
                                 x, lyr["ln2_g"], lyr["ln2_b"])

    hidden = x.reshape(B, S, H)                                         # last_hidden_state
    # output = Linear(hidden.mean(1)) -> [B, 1]  (unmasked mean, matching .mean(1))
    return pallas_pool_head(hidden, params["cls_w"], params["cls_b"], S)


# ------------------------------ main -----------------------------------------

if __name__ == "__main__":
    # Small BERT config consistent with the module's structure (bert-base scaled down).
    cfg = dict(vocab=100, hidden=128, heads=4, intermediate=512,
               layers=2, max_pos=32, type_vocab=2)
    B, S = 2, 8

    key = jax.random.PRNGKey(0)
    pk, ik = jax.random.split(key, 2)
    params = init_bert_params(pk, cfg)

    ids = jax.random.randint(ik, (B, S), 0, cfg["vocab"], dtype=jnp.int32)
    mask = jnp.array([[1, 1, 1, 1, 1, 1, 1, 1],
                      [1, 1, 1, 1, 1, 1, 0, 0]], dtype=jnp.int32)

    fwd = jax.jit(functools.partial(bert_class_forward, cfg=cfg))
    out = fwd(params, ids, mask)
    out = jax.block_until_ready(out)

    assert out.shape == (B, 1) and out.dtype == jnp.float32
    print("KERNEL_OK")
</pallas_src>

<mosaic_0001>
module attributes {stable_mosaic.version = 11 : i64} {
  func.func @_linear_add_ln_kernel(%arg0: i32, %arg1: i32, %arg2: memref<16x128xbf16, #tpu.memory_space<vmem>>, %arg3: memref<128x128xbf16, #tpu.memory_space<vmem>>, %arg4: memref<1x128xf32, #tpu.memory_space<vmem>>, %arg5: memref<16x128xbf16, #tpu.memory_space<vmem>>, %arg6: memref<1x128xf32, #tpu.memory_space<vmem>>, %arg7: memref<1x128xf32, #tpu.memory_space<vmem>>, %arg8: memref<16x128xbf16, #tpu.memory_space<vmem>>, %arg9: memref<16x128xf32, #tpu.memory_space<vmem>>) attributes {dimension_semantics = [#tpu.dimension_semantics<parallel>, #tpu.dimension_semantics<arbitrary>], iteration_bounds = array<i64: 1, 1>, scalar_prefetch = 0 : i64, scratch_operands = 1 : i64, tpu.core_type = #tpu.core_type<tc>, window_params = [{transform_indices = @transform_0, window_bounds = array<i64: 16, 128>}, {transform_indices = @transform_1, window_bounds = array<i64: 128, 128>}, {pipeline_mode = #tpu.pipeline_mode<synchronous>, transform_indices = @transform_2, window_bounds = array<i64: 1, 128>}, {transform_indices = @transform_3, window_bounds = array<i64: 16, 128>}, {pipeline_mode = #tpu.pipeline_mode<synchronous>, transform_indices = @transform_4, window_bounds = array<i64: 1, 128>}, {pipeline_mode = #tpu.pipeline_mode<synchronous>, transform_indices = @transform_5, window_bounds = array<i64: 1, 128>}, {transform_indices = @transform_6, window_bounds = array<i64: 16, 128>}]} {
    %c0_i32 = arith.constant 0 : i32
    %0 = arith.cmpi eq, %arg1, %c0_i32 : i32
    %1 = arith.extui %0 : i1 to i32
    %c0_i32_0 = arith.constant 0 : i32
    %2 = arith.cmpi ne, %1, %c0_i32_0 : i32
    scf.if %2 {
      %cst_10 = arith.constant 0.000000e+00 : f32
      %12 = vector.broadcast %cst_10 : f32 to vector<16x128xf32>
      %c0_11 = arith.constant 0 : index
      %c0_12 = arith.constant 0 : index
      %13 = vector.load %arg9[%c0_11, %c0_12] : memref<16x128xf32, #tpu.memory_space<vmem>>, vector<16x128xf32>
      tpu.vector_store %arg9[%c0_11, %c0_12], %12 {strides = array<i32>} : memref<16x128xf32, #tpu.memory_space<vmem>>, vector<16x128xf32>,
    } else {
    }
    %c0 = arith.constant 0 : index
    %c0_1 = arith.constant 0 : index
    %3 = vector.load %arg9[%c0, %c0_1] : memref<16x128xf32, #tpu.memory_space<vmem>>, vector<16x128xf32>
    %c0_2 = arith.constant 0 : index
    %c0_3 = arith.constant 0 : index
    %4 = vector.load %arg2[%c0_2, %c0_3] : memref<16x128xbf16, #tpu.memory_space<vmem>>, vector<16x128xbf16>
    %c0_4 = arith.constant 0 : index
    %c0_5 = arith.constant 0 : index
    %5 = vector.load %arg3[%c0_4, %c0_5] : memref<128x128xbf16, #tpu.memory_space<vmem>>, vector<128x128xbf16>
    %cst = arith.constant dense<0.000000e+00> : vector<16x128xf32>
    %6 = tpu.matmul %4, %5, %cst {dimension_numbers = #tpu.dot_dimension_numbers<[1], [0], [0], [1], [0, 0, 1, 1], [], []>} : vector<16x128xbf16>, vector<128x128xbf16>, vector<16x128xf32> -> vector<16x128xf32>
    %7 = arith.addf %3, %6 : vector<16x128xf32>
    %c0_6 = arith.constant 0 : index
    %c0_7 = arith.constant 0 : index
    %8 = vector.load %arg9[%c0_6, %c0_7] : memref<16x128xf32, #tpu.memory_space<vmem>>, vector<16x128xf32>
    tpu.vector_store %arg9[%c0_6, %c0_7], %7 {strides = array<i32>} : memref<16x128xf32, #tpu.memory_space<vmem>>, vector<16x128xf32>,
    %c0_i32_8 = arith.constant 0 : i32
    %9 = arith.cmpi eq, %arg1, %c0_i32_8 : i32
    %10 = arith.extui %9 : i1 to i32
    %c0_i32_9 = arith.constant 0 : i32
    %11 = arith.cmpi ne, %10, %c0_i32_9 : i32
    scf.if %11 {
      %c0_10 = arith.constant 0 : index
      %c0_11 = arith.constant 0 : index
      %12 = vector.load %arg9[%c0_10, %c0_11] : memref<16x128xf32, #tpu.memory_space<vmem>>, vector<16x128xf32>
      %c0_12 = arith.constant 0 : index
      %c0_13 = arith.constant 0 : index
      %13 = vector.load %arg4[%c0_12, %c0_13] : memref<1x128xf32, #tpu.memory_space<vmem>>, vector<1x128xf32>
      %14 = vector.broadcast %13 : vector<1x128xf32> to vector<16x128xf32>
      %15 = arith.addf %12, %14 : vector<16x128xf32>
      %c0_14 = arith.constant 0 : index
      %c0_15 = arith.constant 0 : index
      %16 = vector.load %arg5[%c0_14, %c0_15] : memref<16x128xbf16, #tpu.memory_space<vmem>>, vector<16x128xbf16>
      %17 = arith.extf %16 : vector<16x128xbf16> to vector<16x128xf32>
      %18 = arith.addf %15, %17 : vector<16x128xf32>
      %cst_16 = arith.constant dense<0.000000e+00> : vector<16xf32>
      %19 = vector.multi_reduction <add>, %18, %cst_16 [1] : vector<16x128xf32> to vector<16xf32>
      %20 = vector.shape_cast %19 : vector<16xf32> to vector<16x1xf32>
      %cst_17 = arith.constant 1.280000e+02 : f32
      %21 = vector.broadcast %cst_17 : f32 to vector<16x1xf32>
      %22 = arith.divf %20, %21 : vector<16x1xf32>
      %23 = vector.broadcast %22 : vector<16x1xf32> to vector<16x128xf32>
      %24 = arith.subf %18, %23 : vector<16x128xf32>
      %25 = arith.mulf %24, %24 : vector<16x128xf32>
      %cst_18 = arith.constant dense<0.000000e+00> : vector<16xf32>
      %26 = vector.multi_reduction <add>, %25, %cst_18 [1] : vector<16x128xf32> to vector<16xf32>
      %27 = vector.shape_cast %26 : vector<16xf32> to vector<16x1xf32>
      %cst_19 = arith.constant 1.280000e+02 : f32
      %28 = vector.broadcast %cst_19 : f32 to vector<16x1xf32>
      %29 = arith.divf %27, %28 : vector<16x1xf32>
      %30 = vector.broadcast %22 : vector<16x1xf32> to vector<16x128xf32>
      %31 = arith.subf %18, %30 : vector<16x128xf32>
      %cst_20 = arith.constant 9.99999996E-13 : f32
      %32 = vector.broadcast %cst_20 : f32 to vector<16x1xf32>
      %33 = arith.addf %29, %32 : vector<16x1xf32>
      %34 = math.rsqrt %33 : vector<16x1xf32>
      %35 = vector.broadcast %34 : vector<16x1xf32> to vector<16x128xf32>
      %36 = arith.mulf %31, %35 : vector<16x128xf32>
      %c0_21 = arith.constant 0 : index
      %c0_22 = arith.constant 0 : index
      %37 = vector.load %arg6[%c0_21, %c0_22] : memref<1x128xf32, #tpu.memory_space<vmem>>, vector<1x128xf32>
      %38 = vector.broadcast %37 : vector<1x128xf32> to vector<16x128xf32>
      %39 = arith.mulf %36, %38 : vector<16x128xf32>
      %c0_23 = arith.constant 0 : index
      %c0_24 = arith.constant 0 : index
      %40 = vector.load %arg7[%c0_23, %c0_24] : memref<1x128xf32, #tpu.memory_space<vmem>>, vector<1x128xf32>
      %41 = vector.broadcast %40 : vector<1x128xf32> to vector<16x128xf32>
      %42 = arith.addf %39, %41 : vector<16x128xf32>
      %43 = arith.truncf %42 : vector<16x128xf32> to vector<16x128xbf16>
      %c0_25 = arith.constant 0 : index
      %c0_26 = arith.constant 0 : index
      %44 = vector.load %arg8[%c0_25, %c0_26] : memref<16x128xbf16, #tpu.memory_space<vmem>>, vector<16x128xbf16>
      tpu.vector_store %arg8[%c0_25, %c0_26], %43 {strides = array<i32>} : memref<16x128xbf16, #tpu.memory_space<vmem>>, vector<16x128xbf16>,
    } else {
    }
    return
  }
  func.func @transform_0(%arg0: i32, %arg1: i32) -> (i32, i32) {
    %c0_i32 = arith.constant 0 : i32
    return %arg0, %arg1 : i32, i32
  }
  func.func @transform_1(%arg0: i32, %arg1: i32) -> (i32, i32) {
    %c0_i32 = arith.constant 0 : i32
    %c0_i32_0 = arith.constant 0 : i32
    return %arg1, %c0_i32 : i32, i32
  }
  func.func @transform_2(%arg0: i32, %arg1: i32) -> (i32, i32) {
    %c0_i32 = arith.constant 0 : i32
    %c0_i32_0 = arith.constant 0 : i32
    %c0_i32_1 = arith.constant 0 : i32
    return %c0_i32, %c0_i32_0 : i32, i32
  }
  func.func @transform_3(%arg0: i32, %arg1: i32) -> (i32, i32) {
    %c0_i32 = arith.constant 0 : i32
    %c0_i32_0 = arith.constant 0 : i32
    return %arg0, %c0_i32 : i32, i32
  }
  func.func @transform_4(%arg0: i32, %arg1: i32) -> (i32, i32) {
    %c0_i32 = arith.constant 0 : i32
    %c0_i32_0 = arith.constant 0 : i32
    %c0_i32_1 = arith.constant 0 : i32
    return %c0_i32, %c0_i32_0 : i32, i32
  }
  func.func @transform_5(%arg0: i32, %arg1: i32) -> (i32, i32) {
    %c0_i32 = arith.constant 0 : i32
    %c0_i32_0 = arith.constant 0 : i32
    %c0_i32_1 = arith.constant 0 : i32
    return %c0_i32, %c0_i32_0 : i32, i32
  }
  func.func @transform_6(%arg0: i32, %arg1: i32) -> (i32, i32) {
    %c0_i32 = arith.constant 0 : i32
    %c0_i32_0 = arith.constant 0 : i32
    return %arg0, %c0_i32 : i32, i32
  }
}

module attributes {stable_mosaic.version = 11 : i64} {
  func.func @_attention_kernel(%arg0: i32, %arg1: memref<1x8x384xbf16, #tpu.memory_space<vmem>>, %arg2: memref<1x1x8xf32, #tpu.memory_space<vmem>>, %arg3: memref<1x8x128xbf16, #tpu.memory_space<vmem>>) attributes {dimension_semantics = [#tpu.dimension_semantics<parallel>], iteration_bounds = array<i64: 2>, scalar_prefetch = 0 : i64, scratch_operands = 0 : i64, tpu.core_type = #tpu.core_type<tc>, window_params = [{transform_indices = @transform_0, window_bounds = array<i64: 1, 8, 384>}, {transform_indices = @transform_1, window_bounds = array<i64: 1, 1, 8>}, {transform_indices = @transform_2, window_bounds = array<i64: 1, 8, 128>}]} {
    %c0 = arith.constant 0 : index
    %c0_0 = arith.constant 0 : index
    %c0_1 = arith.constant 0 : index
    %0 = vector.load %arg2[%c0, %c0_0, %c0_1] : memref<1x1x8xf32, #tpu.memory_space<vmem>>, vector<1x1x8xf32>
    %1 = vector.shape_cast %0 : vector<1x1x8xf32> to vector<1x8xf32>
    %c0_2 = arith.constant 0 : index
    %c0_3 = arith.constant 0 : index
    %c0_4 = arith.constant 0 : index
    %2 = vector.load %arg1[%c0_2, %c0_3, %c0_4] : memref<1x8x384xbf16, #tpu.memory_space<vmem>>, vector<1x8x32xbf16>
    %3 = vector.shape_cast %2 : vector<1x8x32xbf16> to vector<8x32xbf16>
    %c0_5 = arith.constant 0 : index
    %c0_6 = arith.constant 0 : index
    %c128 = arith.constant 128 : index
    %4 = vector.load %arg1[%c0_5, %c0_6, %c128] : memref<1x8x384xbf16, #tpu.memory_space<vmem>>, vector<1x8x32xbf16>
    %5 = vector.shape_cast %4 : vector<1x8x32xbf16> to vector<8x32xbf16>
    %c0_7 = arith.constant 0 : index
    %c0_8 = arith.constant 0 : index
    %c256 = arith.constant 256 : index
    %6 = vector.load %arg1[%c0_7, %c0_8, %c256] : memref<1x8x384xbf16, #tpu.memory_space<vmem>>, vector<1x8x32xbf16>
    %7 = vector.shape_cast %6 : vector<1x8x32xbf16> to vector<8x32xbf16>
    %cst = arith.constant dense<0.000000e+00> : vector<8x8xf32>
    %8 = tpu.matmul %3, %5, %cst {dimension_numbers = #tpu.dot_dimension_numbers<[1], [1], [0], [0], [0, 0, 1, 0], [], []>} : vector<8x32xbf16>, vector<8x32xbf16>, vector<8x8xf32> -> vector<8x8xf32>
    %cst_9 = arith.constant 0.176776692 : f32
    %9 = vector.broadcast %cst_9 : f32 to vector<8x8xf32>
    %10 = arith.mulf %8, %9 : vector<8x8xf32>
    %11 = vector.broadcast %1 : vector<1x8xf32> to vector<8x8xf32>
    %12 = arith.addf %10, %11 : vector<8x8xf32>
    %cst_10 = arith.constant dense<0xFF800000> : vector<8xf32>
    %13 = vector.multi_reduction <maximumf>, %12, %cst_10 [1] : vector<8x8xf32> to vector<8xf32>
    %14 = vector.shape_cast %13 : vector<8xf32> to vector<8x1xf32>
    %15 = vector.broadcast %14 : vector<8x1xf32> to vector<8x8xf32>
    %16 = arith.subf %12, %15 : vector<8x8xf32>
    %17 = math.exp %16 : vector<8x8xf32>
    %cst_11 = arith.constant dense<0.000000e+00> : vector<8xf32>
    %18 = vector.multi_reduction <add>, %17, %cst_11 [1] : vector<8x8xf32> to vector<8xf32>
    %19 = vector.shape_cast %18 : vector<8xf32> to vector<8x1xf32>
    %20 = arith.truncf %17 : vector<8x8xf32> to vector<8x8xbf16>
    %cst_12 = arith.constant dense<0.000000e+00> : vector<8x32xf32>
    %21 = tpu.matmul %20, %7, %cst_12 {dimension_numbers = #tpu.dot_dimension_numbers<[1], [0], [0], [1], [0, 0, 1, 1], [], []>} : vector<8x8xbf16>, vector<8x32xbf16>, vector<8x32xf32> -> vector<8x32xf32>
    %22 = tpu.reciprocal %19 {approx = true} : vector<8x1xf32> -> vector<8x1xf32>
    %23 = vector.broadcast %22 : vector<8x1xf32> to vector<8x32xf32>
    %24 = arith.mulf %21, %23 : vector<8x32xf32>
    %c0_13 = arith.constant 0 : index
    %c0_14 = arith.constant 0 : index
    %c32 = arith.constant 32 : index
    %25 = vector.load %arg1[%c0_13, %c0_14, %c32] : memref<1x8x384xbf16, #tpu.memory_space<vmem>>, vector<1x8x32xbf16>
    %26 = vector.shape_cast %25 : vector<1x8x32xbf16> to vector<8x32xbf16>
    %c0_15 = arith.constant 0 : index
    %c0_16 = arith.constant 0 : index
    %c160 = arith.constant 160 : index
    %27 = vector.load %arg1[%c0_15, %c0_16, %c160] : memref<1x8x384xbf16, #tpu.memory_space<vmem>>, vector<1x8x32xbf16>
    %28 = vector.shape_cast %27 : vector<1x8x32xbf16> to vector<8x32xbf16>
    %c0_17 = arith.constant 0 : index
    %c0_18 = arith.constant 0 : index
    %c288 = arith.constant 288 : index
    %29 = vector.load %arg1[%c0_17, %c0_18, %c288] : memref<1x8x384xbf16, #tpu.memory_space<vmem>>, vector<1x8x32xbf16>
    %30 = vector.shape_cast %29 : vector<1x8x32xbf16> to vector<8x32xbf16>
    %cst_19 = arith.constant dense<0.000000e+00> : vector<8x8xf32>
    %31 = tpu.matmul %26, %28, %cst_19 {dimension_numbers = #tpu.dot_dimension_numbers<[1], [1], [0], [0], [0, 0, 1, 0], [], []>} : vector<8x32xbf16>, vector<8x32xbf16>, vector<8x8xf32> -> vector<8x8xf32>
    %cst_20 = arith.constant 0.176776692 : f32
    %32 = vector.broadcast %cst_20 : f32 to vector<8x8xf32>
    %33 = arith.mulf %31, %32 : vector<8x8xf32>
    %34 = vector.broadcast %1 : vector<1x8xf32> to vector<8x8xf32>
    %35 = arith.addf %33, %34 : vector<8x8xf32>
    %cst_21 = arith.constant dense<0xFF800000> : vector<8xf32>
    %36 = vector.multi_reduction <maximumf>, %35, %cst_21 [1] : vector<8x8xf32> to vector<8xf32>
    %37 = vector.shape_cast %36 : vector<8xf32> to vector<8x1xf32>
    %38 = vector.broadcast %37 : vector<8x1xf32> to vector<8x8xf32>
    %39 = arith.subf %35, %38 : vector<8x8xf32>
    %40 = math.exp %39 : vector<8x8xf32>
    %cst_22 = arith.constant dense<0.000000e+00> : vector<8xf32>
    %41 = vector.multi_reduction <add>, %40, %cst_22 [1] : vector<8x8xf32> to vector<8xf32>
    %42 = vector.shape_cast %41 : vector<8xf32> to vector<8x1xf32>
    %43 = arith.truncf %40 : vector<8x8xf32> to vector<8x8xbf16>
    %cst_23 = arith.constant dense<0.000000e+00> : vector<8x32xf32>
    %44 = tpu.matmul %43, %30, %cst_23 {dimension_numbers = #tpu.dot_dimension_numbers<[1], [0], [0], [1], [0, 0, 1, 1], [], []>} : vector<8x8xbf16>, vector<8x32xbf16>, vector<8x32xf32> -> vector<8x32xf32>
    %45 = tpu.reciprocal %42 {approx = true} : vector<8x1xf32> -> vector<8x1xf32>
    %46 = vector.broadcast %45 : vector<8x1xf32> to vector<8x32xf32>
    %47 = arith.mulf %44, %46 : vector<8x32xf32>
    %c0_24 = arith.constant 0 : index
    %c0_25 = arith.constant 0 : index
    %c64 = arith.constant 64 : index
    %48 = vector.load %arg1[%c0_24, %c0_25, %c64] : memref<1x8x384xbf16, #tpu.memory_space<vmem>>, vector<1x8x32xbf16>
    %49 = vector.shape_cast %48 : vector<1x8x32xbf16> to vector<8x32xbf16>
    %c0_26 = arith.constant 0 : index
    %c0_27 = arith.constant 0 : index
    %c192 = arith.constant 192 : index
    %50 = vector.load %arg1[%c0_26, %c0_27, %c192] : memref<1x8x384xbf16, #tpu.memory_space<vmem>>, vector<1x8x32xbf16>
    %51 = vector.shape_cast %50 : vector<1x8x32xbf16> to vector<8x32xbf16>
    %c0_28 = arith.constant 0 : index
    %c0_29 = arith.constant 0 : index
    %c320 = arith.constant 320 : index
    %52 = vector.load %arg1[%c0_28, %c0_29, %c320] : memref<1x8x384xbf16, #tpu.memory_space<vmem>>, vector<1x8x32xbf16>
    %53 = vector.shape_cast %52 : vector<1x8x32xbf16> to vector<8x32xbf16>
    %cst_30 = arith.constant dense<0.000000e+00> : vector<8x8xf32>
    %54 = tpu.matmul %49, %51, %cst_30 {dimension_numbers = #tpu.dot_dimension_numbers<[1], [1], [0], [0], [0, 0, 1, 0], [], []>} : vector<8x32xbf16>, vector<8x32xbf16>, vector<8x8xf32> -> vector<8x8xf32>
    %cst_31 = arith.constant 0.176776692 : f32
    %55 = vector.broadcast %cst_31 : f32 to vector<8x8xf32>
    %56 = arith.mulf %54, %55 : vector<8x8xf32>
    %57 = vector.broadcast %1 : vector<1x8xf32> to vector<8x8xf32>
    %58 = arith.addf %56, %57 : vector<8x8xf32>
    %cst_32 = arith.constant dense<0xFF800000> : vector<8xf32>
    %59 = vector.multi_reduction <maximumf>, %58, %cst_32 [1] : vector<8x8xf32> to vector<8xf32>
    %60 = vector.shape_cast %59 : vector<8xf32> to vector<8x1xf32>
    %61 = vector.broadcast %60 : vector<8x1xf32> to vector<8x8xf32>
    %62 = arith.subf %58, %61 : vector<8x8xf32>
    %63 = math.exp %62 : vector<8x8xf32>
    %cst_33 = arith.constant dense<0.000000e+00> : vector<8xf32>
    %64 = vector.multi_reduction <add>, %63, %cst_33 [1] : vector<8x8xf32> to vector<8xf32>
    %65 = vector.shape_cast %64 : vector<8xf32> to vector<8x1xf32>
    %66 = arith.truncf %63 : vector<8x8xf32> to vector<8x8xbf16>
    %cst_34 = arith.constant dense<0.000000e+00> : vector<8x32xf32>
    %67 = tpu.matmul %66, %53, %cst_34 {dimension_numbers = #tpu.dot_dimension_numbers<[1], [0], [0], [1], [0, 0, 1, 1], [], []>} : vector<8x8xbf16>, vector<8x32xbf16>, vector<8x32xf32> -> vector<8x32xf32>
    %68 = tpu.reciprocal %65 {approx = true} : vector<8x1xf32> -> vector<8x1xf32>
    %69 = vector.broadcast %68 : vector<8x1xf32> to vector<8x32xf32>
    %70 = arith.mulf %67, %69 : vector<8x32xf32>
    %c0_35 = arith.constant 0 : index
    %c0_36 = arith.constant 0 : index
    %c96 = arith.constant 96 : index
    %71 = vector.load %arg1[%c0_35, %c0_36, %c96] : memref<1x8x384xbf16, #tpu.memory_space<vmem>>, vector<1x8x32xbf16>
    %72 = vector.shape_cast %71 : vector<1x8x32xbf16> to vector<8x32xbf16>
    %c0_37 = arith.constant 0 : index
    %c0_38 = arith.constant 0 : index
    %c224 = arith.constant 224 : index
    %73 = vector.load %arg1[%c0_37, %c0_38, %c224] : memref<1x8x384xbf16, #tpu.memory_space<vmem>>, vector<1x8x32xbf16>
    %74 = vector.shape_cast %73 : vector<1x8x32xbf16> to vector<8x32xbf16>
    %c0_39 = arith.constant 0 : index
    %c0_40 = arith.constant 0 : index
    %c352 = arith.constant 352 : index
    %75 = vector.load %arg1[%c0_39, %c0_40, %c352] : memref<1x8x384xbf16, #tpu.memory_space<vmem>>, vector<1x8x32xbf16>
    %76 = vector.shape_cast %75 : vector<1x8x32xbf16> to vector<8x32xbf16>
    %cst_41 = arith.constant dense<0.000000e+00> : vector<8x8xf32>
    %77 = tpu.matmul %72, %74, %cst_41 {dimension_numbers = #tpu.dot_dimension_numbers<[1], [1], [0], [0], [0, 0, 1, 0], [], []>} : vector<8x32xbf16>, vector<8x32xbf16>, vector<8x8xf32> -> vector<8x8xf32>
    %cst_42 = arith.constant 0.176776692 : f32
    %78 = vector.broadcast %cst_42 : f32 to vector<8x8xf32>
    %79 = arith.mulf %77, %78 : vector<8x8xf32>
    %80 = vector.broadcast %1 : vector<1x8xf32> to vector<8x8xf32>
    %81 = arith.addf %79, %80 : vector<8x8xf32>
    %cst_43 = arith.constant dense<0xFF800000> : vector<8xf32>
    %82 = vector.multi_reduction <maximumf>, %81, %cst_43 [1] : vector<8x8xf32> to vector<8xf32>
    %83 = vector.shape_cast %82 : vector<8xf32> to vector<8x1xf32>
    %84 = vector.broadcast %83 : vector<8x1xf32> to vector<8x8xf32>
    %85 = arith.subf %81, %84 : vector<8x8xf32>
    %86 = math.exp %85 : vector<8x8xf32>
    %cst_44 = arith.constant dense<0.000000e+00> : vector<8xf32>
    %87 = vector.multi_reduction <add>, %86, %cst_44 [1] : vector<8x8xf32> to vector<8xf32>
    %88 = vector.shape_cast %87 : vector<8xf32> to vector<8x1xf32>
    %89 = arith.truncf %86 : vector<8x8xf32> to vector<8x8xbf16>
    %cst_45 = arith.constant dense<0.000000e+00> : vector<8x32xf32>
    %90 = tpu.matmul %89, %76, %cst_45 {dimension_numbers = #tpu.dot_dimension_numbers<[1], [0], [0], [1], [0, 0, 1, 1], [], []>} : vector<8x8xbf16>, vector<8x32xbf16>, vector<8x32xf32> -> vector<8x32xf32>
    %91 = tpu.reciprocal %88 {approx = true} : vector<8x1xf32> -> vector<8x1xf32>
    %92 = vector.broadcast %91 : vector<8x1xf32> to vector<8x32xf32>
    %93 = arith.mulf %90, %92 : vector<8x32xf32>
    %94 = tpu.concatenate %24, %47, %70, %93 in 1 : vector<8x32xf32>, vector<8x32xf32>, vector<8x32xf32>, vector<8x32xf32> -> vector<8x128xf32>
    %95 = arith.truncf %94 : vector<8x128xf32> to vector<8x128xbf16>
    %c0_46 = arith.constant 0 : index
    %c0_47 = arith.constant 0 : index
    %c0_48 = arith.constant 0 : index
    %96 = vector.load %arg3[%c0_46, %c0_47, %c0_48] : memref<1x8x128xbf16, #tpu.memory_space<vmem>>, vector<1x8x128xbf16>
    %97 = vector.shape_cast %96 : vector<1x8x128xbf16> to vector<8x128xbf16>
    %98 = vector.shape_cast %95 : vector<8x128xbf16> to vector<1x8x128xbf16>
    tpu.vector_store %arg3[%c0_46, %c0_47, %c0_48], %98 {strides = array<i32>} : memref<1x8x128xbf16, #tpu.memory_space<vmem>>, vector<1x8x128xbf16>,
    return
  }
  func.func @transform_0(%arg0: i32) -> (i32, i32, i32) {
    %c0_i32 = arith.constant 0 : i32
    %c0_i32_0 = arith.constant 0 : i32
    %c0_i32_1 = arith.constant 0 : i32
    return %arg0, %c0_i32, %c0_i32_0 : i32, i32, i32
  }
  func.func @transform_1(%arg0: i32) -> (i32, i32, i32) {
    %c0_i32 = arith.constant 0 : i32
    %c0_i32_0 = arith.constant 0 : i32
    %c0_i32_1 = arith.constant 0 : i32
    return %arg0, %c0_i32, %c0_i32_0 : i32, i32, i32
  }
  func.func @transform_2(%arg0: i32) -> (i32, i32, i32) {
    %c0_i32 = arith.constant 0 : i32
    %c0_i32_0 = arith.constant 0 : i32
    %c0_i32_1 = arith.constant 0 : i32
    return %arg0, %c0_i32, %c0_i32_0 : i32, i32, i32
  }
}

module attributes {stable_mosaic.version = 11 : i64} {
  func.func @_ln_kernel(%arg0: i32, %arg1: memref<16x128xf32, #tpu.memory_space<vmem>>, %arg2: memref<1x128xf32, #tpu.memory_space<vmem>>, %arg3: memref<1x128xf32, #tpu.memory_space<vmem>>, %arg4: memref<16x128xbf16, #tpu.memory_space<vmem>>) attributes {dimension_semantics = [#tpu.dimension_semantics<parallel>], iteration_bounds = array<i64: 1>, scalar_prefetch = 0 : i64, scratch_operands = 0 : i64, tpu.core_type = #tpu.core_type<tc>, window_params = [{transform_indices = @transform_0, window_bounds = array<i64: 16, 128>}, {pipeline_mode = #tpu.pipeline_mode<synchronous>, transform_indices = @transform_1, window_bounds = array<i64: 1, 128>}, {pipeline_mode = #tpu.pipeline_mode<synchronous>, transform_indices = @transform_2, window_bounds = array<i64: 1, 128>}, {transform_indices = @transform_3, window_bounds = array<i64: 16, 128>}]} {
    %c0 = arith.constant 0 : index
    %c0_0 = arith.constant 0 : index
    %0 = vector.load %arg1[%c0, %c0_0] : memref<16x128xf32, #tpu.memory_space<vmem>>, vector<16x128xf32>
    %cst = arith.constant dense<0.000000e+00> : vector<16xf32>
    %1 = vector.multi_reduction <add>, %0, %cst [1] : vector<16x128xf32> to vector<16xf32>
    %2 = vector.shape_cast %1 : vector<16xf32> to vector<16x1xf32>
    %cst_1 = arith.constant 1.280000e+02 : f32
    %3 = vector.broadcast %cst_1 : f32 to vector<16x1xf32>
    %4 = arith.divf %2, %3 : vector<16x1xf32>
    %5 = vector.broadcast %4 : vector<16x1xf32> to vector<16x128xf32>
    %6 = arith.subf %0, %5 : vector<16x128xf32>
    %7 = arith.mulf %6, %6 : vector<16x128xf32>
    %cst_2 = arith.constant dense<0.000000e+00> : vector<16xf32>
    %8 = vector.multi_reduction <add>, %7, %cst_2 [1] : vector<16x128xf32> to vector<16xf32>
    %9 = vector.shape_cast %8 : vector<16xf32> to vector<16x1xf32>
    %cst_3 = arith.constant 1.280000e+02 : f32
    %10 = vector.broadcast %cst_3 : f32 to vector<16x1xf32>
    %11 = arith.divf %9, %10 : vector<16x1xf32>
    %12 = vector.broadcast %4 : vector<16x1xf32> to vector<16x128xf32>
    %13 = arith.subf %0, %12 : vector<16x128xf32>
    %cst_4 = arith.constant 9.99999996E-13 : f32
    %14 = vector.broadcast %cst_4 : f32 to vector<16x1xf32>
    %15 = arith.addf %11, %14 : vector<16x1xf32>
    %16 = math.rsqrt %15 : vector<16x1xf32>
    %17 = vector.broadcast %16 : vector<16x1xf32> to vector<16x128xf32>
    %18 = arith.mulf %13, %17 : vector<16x128xf32>
    %c0_5 = arith.constant 0 : index
    %c0_6 = arith.constant 0 : index
    %19 = vector.load %arg2[%c0_5, %c0_6] : memref<1x128xf32, #tpu.memory_space<vmem>>, vector<1x128xf32>
    %20 = vector.broadcast %19 : vector<1x128xf32> to vector<16x128xf32>
    %21 = arith.mulf %18, %20 : vector<16x128xf32>
    %c0_7 = arith.constant 0 : index
    %c0_8 = arith.constant 0 : index
    %22 = vector.load %arg3[%c0_7, %c0_8] : memref<1x128xf32, #tpu.memory_space<vmem>>, vector<1x128xf32>
    %23 = vector.broadcast %22 : vector<1x128xf32> to vector<16x128xf32>
    %24 = arith.addf %21, %23 : vector<16x128xf32>
    %25 = arith.truncf %24 : vector<16x128xf32> to vector<16x128xbf16>
    %c0_9 = arith.constant 0 : index
    %c0_10 = arith.constant 0 : index
    %26 = vector.load %arg4[%c0_9, %c0_10] : memref<16x128xbf16, #tpu.memory_space<vmem>>, vector<16x128xbf16>
    tpu.vector_store %arg4[%c0_9, %c0_10], %25 {strides = array<i32>} : memref<16x128xbf16, #tpu.memory_space<vmem>>, vector<16x128xbf16>,
    return
  }
  func.func @transform_0(%arg0: i32) -> (i32, i32) {
    %c0_i32 = arith.constant 0 : i32
    %c0_i32_0 = arith.constant 0 : i32
    return %arg0, %c0_i32 : i32, i32
  }
  func.func @transform_1(%arg0: i32) -> (i32, i32) {
    %c0_i32 = arith.constant 0 : i32
    %c0_i32_0 = arith.constant 0 : i32
    %c0_i32_1 = arith.constant 0 : i32
    return %c0_i32, %c0_i32_0 : i32, i32
  }
  func.func @transform_2(%arg0: i32) -> (i32, i32) {
    %c0_i32 = arith.constant 0 : i32
    %c0_i32_0 = arith.constant 0 : i32
    %c0_i32_1 = arith.constant 0 : i32
    return %c0_i32, %c0_i32_0 : i32, i32
  }
  func.func @transform_3(%arg0: i32) -> (i32, i32) {
    %c0_i32 = arith.constant 0 : i32
    %c0_i32_0 = arith.constant 0 : i32
    return %arg0, %c0_i32 : i32, i32
  }
}

module attributes {stable_mosaic.version = 11 : i64} {
  func.func @_linear_kernel(%arg0: i32, %arg1: i32, %arg2: i32, %arg3: memref<16x128xbf16, #tpu.memory_space<vmem>>, %arg4: memref<128x384xbf16, #tpu.memory_space<vmem>>, %arg5: memref<1x384xf32, #tpu.memory_space<vmem>>, %arg6: memref<16x384xbf16, #tpu.memory_space<vmem>>, %arg7: memref<16x384xf32, #tpu.memory_space<vmem>>) attributes {dimension_semantics = [#tpu.dimension_semantics<parallel>, #tpu.dimension_semantics<parallel>, #tpu.dimension_semantics<arbitrary>], iteration_bounds = array<i64: 1, 1, 1>, scalar_prefetch = 0 : i64, scratch_operands = 1 : i64, tpu.core_type = #tpu.core_type<tc>, window_params = [{transform_indices = @transform_0, window_bounds = array<i64: 16, 128>}, {transform_indices = @transform_1, window_bounds = array<i64: 128, 384>}, {transform_indices = @transform_2, window_bounds = array<i64: 1, 384>}, {transform_indices = @transform_3, window_bounds = array<i64: 16, 384>}]} {
    %c0_i32 = arith.constant 0 : i32
    %0 = arith.cmpi eq, %arg2, %c0_i32 : i32
    %1 = arith.extui %0 : i1 to i32
    %c0_i32_0 = arith.constant 0 : i32
    %2 = arith.cmpi ne, %1, %c0_i32_0 : i32
    scf.if %2 {
      %cst_10 = arith.constant 0.000000e+00 : f32
      %12 = vector.broadcast %cst_10 : f32 to vector<16x384xf32>
      %c0_11 = arith.constant 0 : index
      %c0_12 = arith.constant 0 : index
      %13 = vector.load %arg7[%c0_11, %c0_12] : memref<16x384xf32, #tpu.memory_space<vmem>>, vector<16x384xf32>
      tpu.vector_store %arg7[%c0_11, %c0_12], %12 {strides = array<i32>} : memref<16x384xf32, #tpu.memory_space<vmem>>, vector<16x384xf32>,
    } else {
    }
    %c0 = arith.constant 0 : index
    %c0_1 = arith.constant 0 : index
    %3 = vector.load %arg7[%c0, %c0_1] : memref<16x384xf32, #tpu.memory_space<vmem>>, vector<16x384xf32>
    %c0_2 = arith.constant 0 : index
    %c0_3 = arith.constant 0 : index
    %4 = vector.load %arg3[%c0_2, %c0_3] : memref<16x128xbf16, #tpu.memory_space<vmem>>, vector<16x128xbf16>
    %c0_4 = arith.constant 0 : index
    %c0_5 = arith.constant 0 : index
    %5 = vector.load %arg4[%c0_4, %c0_5] : memref<128x384xbf16, #tpu.memory_space<vmem>>, vector<128x384xbf16>
    %cst = arith.constant dense<0.000000e+00> : vector<16x384xf32>
    %6 = tpu.matmul %4, %5, %cst {dimension_numbers = #tpu.dot_dimension_numbers<[1], [0], [0], [1], [0, 0, 1, 1], [], []>} : vector<16x128xbf16>, vector<128x384xbf16>, vector<16x384xf32> -> vector<16x384xf32>
    %7 = arith.addf %3, %6 : vector<16x384xf32>
    %c0_6 = arith.constant 0 : index
    %c0_7 = arith.constant 0 : index
    %8 = vector.load %arg7[%c0_6, %c0_7] : memref<16x384xf32, #tpu.memory_space<vmem>>, vector<16x384xf32>
    tpu.vector_store %arg7[%c0_6, %c0_7], %7 {strides = array<i32>} : memref<16x384xf32, #tpu.memory_space<vmem>>, vector<16x384xf32>,
    %c0_i32_8 = arith.constant 0 : i32
    %9 = arith.cmpi eq, %arg2, %c0_i32_8 : i32
    %10 = arith.extui %9 : i1 to i32
    %c0_i32_9 = arith.constant 0 : i32
    %11 = arith.cmpi ne, %10, %c0_i32_9 : i32
    scf.if %11 {
      %c0_10 = arith.constant 0 : index
      %c0_11 = arith.constant 0 : index
      %12 = vector.load %arg7[%c0_10, %c0_11] : memref<16x384xf32, #tpu.memory_space<vmem>>, vector<16x384xf32>
      %c0_12 = arith.constant 0 : index
      %c0_13 = arith.constant 0 : index
      %13 = vector.load %arg5[%c0_12, %c0_13] : memref<1x384xf32, #tpu.memory_space<vmem>>, vector<1x384xf32>
      %14 = vector.broadcast %13 : vector<1x384xf32> to vector<16x384xf32>
      %15 = arith.addf %12, %14 : vector<16x384xf32>
      %16 = arith.truncf %15 : vector<16x384xf32> to vector<16x384xbf16>
      %c0_14 = arith.constant 0 : index
      %c0_15 = arith.constant 0 : index
      %17 = vector.load %arg6[%c0_14, %c0_15] : memref<16x384xbf16, #tpu.memory_space<vmem>>, vector<16x384xbf16>
      tpu.vector_store %arg6[%c0_14, %c0_15], %16 {strides = array<i32>} : memref<16x384xbf16, #tpu.memory_space<vmem>>, vector<16x384xbf16>,
    } else {
    }
    return
  }
  func.func @transform_0(%arg0: i32, %arg1: i32, %arg2: i32) -> (i32, i32) {
    %c0_i32 = arith.constant 0 : i32
    return %arg0, %arg2 : i32, i32
  }
  func.func @transform_1(%arg0: i32, %arg1: i32, %arg2: i32) -> (i32, i32) {
    %c0_i32 = arith.constant 0 : i32
    return %arg2, %arg1 : i32, i32
  }
  func.func @transform_2(%arg0: i32, %arg1: i32, %arg2: i32) -> (i32, i32) {
    %c0_i32 = arith.constant 0 : i32
    %c0_i32_0 = arith.constant 0 : i32
    return %c0_i32, %arg1 : i32, i32
  }
  func.func @transform_3(%arg0: i32, %arg1: i32, %arg2: i32) -> (i32, i32) {
    %c0_i32 = arith.constant 0 : i32
    return %arg0, %arg1 : i32, i32
  }
}

module attributes {stable_mosaic.version = 11 : i64} {
  func.func @_linear_kernel(%arg0: i32, %arg1: i32, %arg2: i32, %arg3: memref<16x128xbf16, #tpu.memory_space<vmem>>, %arg4: memref<128x512xbf16, #tpu.memory_space<vmem>>, %arg5: memref<1x512xf32, #tpu.memory_space<vmem>>, %arg6: memref<16x512xbf16, #tpu.memory_space<vmem>>, %arg7: memref<16x512xf32, #tpu.memory_space<vmem>>) attributes {dimension_semantics = [#tpu.dimension_semantics<parallel>, #tpu.dimension_semantics<parallel>, #tpu.dimension_semantics<arbitrary>], iteration_bounds = array<i64: 1, 1, 1>, scalar_prefetch = 0 : i64, scratch_operands = 1 : i64, tpu.core_type = #tpu.core_type<tc>, window_params = [{transform_indices = @transform_0, window_bounds = array<i64: 16, 128>}, {transform_indices = @transform_1, window_bounds = array<i64: 128, 512>}, {transform_indices = @transform_2, window_bounds = array<i64: 1, 512>}, {transform_indices = @transform_3, window_bounds = array<i64: 16, 512>}]} {
    %c0_i32 = arith.constant 0 : i32
    %0 = arith.cmpi eq, %arg2, %c0_i32 : i32
    %1 = arith.extui %0 : i1 to i32
    %c0_i32_0 = arith.constant 0 : i32
    %2 = arith.cmpi ne, %1, %c0_i32_0 : i32
    scf.if %2 {
      %cst_10 = arith.constant 0.000000e+00 : f32
      %12 = vector.broadcast %cst_10 : f32 to vector<16x512xf32>
      %c0_11 = arith.constant 0 : index
      %c0_12 = arith.constant 0 : index
      %13 = vector.load %arg7[%c0_11, %c0_12] : memref<16x512xf32, #tpu.memory_space<vmem>>, vector<16x512xf32>
      tpu.vector_store %arg7[%c0_11, %c0_12], %12 {strides = array<i32>} : memref<16x512xf32, #tpu.memory_space<vmem>>, vector<16x512xf32>,
    } else {
    }
    %c0 = arith.constant 0 : index
    %c0_1 = arith.constant 0 : index
    %3 = vector.load %arg7[%c0, %c0_1] : memref<16x512xf32, #tpu.memory_space<vmem>>, vector<16x512xf32>
    %c0_2 = arith.constant 0 : index
    %c0_3 = arith.constant 0 : index
    %4 = vector.load %arg3[%c0_2, %c0_3] : memref<16x128xbf16, #tpu.memory_space<vmem>>, vector<16x128xbf16>
    %c0_4 = arith.constant 0 : index
    %c0_5 = arith.constant 0 : index
    %5 = vector.load %arg4[%c0_4, %c0_5] : memref<128x512xbf16, #tpu.memory_space<vmem>>, vector<128x512xbf16>
    %cst = arith.constant dense<0.000000e+00> : vector<16x512xf32>
    %6 = tpu.matmul %4, %5, %cst {dimension_numbers = #tpu.dot_dimension_numbers<[1], [0], [0], [1], [0, 0, 1, 1], [], []>} : vector<16x128xbf16>, vector<128x512xbf16>, vector<16x512xf32> -> vector<16x512xf32>
    %7 = arith.addf %3, %6 : vector<16x512xf32>
    %c0_6 = arith.constant 0 : index
    %c0_7 = arith.constant 0 : index
    %8 = vector.load %arg7[%c0_6, %c0_7] : memref<16x512xf32, #tpu.memory_space<vmem>>, vector<16x512xf32>
    tpu.vector_store %arg7[%c0_6, %c0_7], %7 {strides = array<i32>} : memref<16x512xf32, #tpu.memory_space<vmem>>, vector<16x512xf32>,
    %c0_i32_8 = arith.constant 0 : i32
    %9 = arith.cmpi eq, %arg2, %c0_i32_8 : i32
    %10 = arith.extui %9 : i1 to i32
    %c0_i32_9 = arith.constant 0 : i32
    %11 = arith.cmpi ne, %10, %c0_i32_9 : i32
    scf.if %11 {
      %c0_10 = arith.constant 0 : index
      %c0_11 = arith.constant 0 : index
      %12 = vector.load %arg7[%c0_10, %c0_11] : memref<16x512xf32, #tpu.memory_space<vmem>>, vector<16x512xf32>
      %c0_12 = arith.constant 0 : index
      %c0_13 = arith.constant 0 : index
      %13 = vector.load %arg5[%c0_12, %c0_13] : memref<1x512xf32, #tpu.memory_space<vmem>>, vector<1x512xf32>
      %14 = vector.broadcast %13 : vector<1x512xf32> to vector<16x512xf32>
      %15 = arith.addf %12, %14 : vector<16x512xf32>
      %cst_14 = arith.constant 5.000000e-01 : f32
      %16 = vector.broadcast %cst_14 : f32 to vector<16x512xf32>
      %17 = arith.mulf %16, %15 : vector<16x512xf32>
      %cst_15 = arith.constant 4.471500e-02 : f32
      %18 = vector.broadcast %cst_15 : f32 to vector<16x512xf32>
      %19 = arith.mulf %18, %15 : vector<16x512xf32>
      %20 = arith.mulf %19, %15 : vector<16x512xf32>
      %21 = arith.mulf %20, %15 : vector<16x512xf32>
      %22 = arith.addf %15, %21 : vector<16x512xf32>
      %cst_16 = arith.constant 0.797884583 : f32
      %23 = vector.broadcast %cst_16 : f32 to vector<16x512xf32>
      %24 = arith.mulf %23, %22 : vector<16x512xf32>
      %25 = math.tanh %24 : vector<16x512xf32>
      %cst_17 = arith.constant 1.000000e+00 : f32
      %26 = vector.broadcast %cst_17 : f32 to vector<16x512xf32>
      %27 = arith.addf %26, %25 : vector<16x512xf32>
      %28 = arith.mulf %17, %27 : vector<16x512xf32>
      %29 = arith.truncf %28 : vector<16x512xf32> to vector<16x512xbf16>
      %c0_18 = arith.constant 0 : index
      %c0_19 = arith.constant 0 : index
      %30 = vector.load %arg6[%c0_18, %c0_19] : memref<16x512xbf16, #tpu.memory_space<vmem>>, vector<16x512xbf16>
      tpu.vector_store %arg6[%c0_18, %c0_19], %29 {strides = array<i32>} : memref<16x512xbf16, #tpu.memory_space<vmem>>, vector<16x512xbf16>,
    } else {
    }
    return
  }
  func.func @transform_0(%arg0: i32, %arg1: i32, %arg2: i32) -> (i32, i32) {
    %c0_i32 = arith.constant 0 : i32
    return %arg0, %arg2 : i32, i32
  }
  func.func @transform_1(%arg0: i32, %arg1: i32, %arg2: i32) -> (i32, i32) {
    %c0_i32 = arith.constant 0 : i32
    return %arg2, %arg1 : i32, i32
  }
  func.func @transform_2(%arg0: i32, %arg1: i32, %arg2: i32) -> (i32, i32) {
    %c0_i32 = arith.constant 0 : i32
    %c0_i32_0 = arith.constant 0 : i32
    return %c0_i32, %arg1 : i32, i32
  }
  func.func @transform_3(%arg0: i32, %arg1: i32, %arg2: i32) -> (i32, i32) {
    %c0_i32 = arith.constant 0 : i32
    return %arg0, %arg1 : i32, i32
  }
}

module attributes {stable_mosaic.version = 11 : i64} {
  func.func @_linear_kernel(%arg0: i32, %arg1: i32, %arg2: i32, %arg3: memref<16x128xbf16, #tpu.memory_space<vmem>>, %arg4: memref<128x384xbf16, #tpu.memory_space<vmem>>, %arg5: memref<1x384xf32, #tpu.memory_space<vmem>>, %arg6: memref<16x384xbf16, #tpu.memory_space<vmem>>, %arg7: memref<16x384xf32, #tpu.memory_space<vmem>>) attributes {dimension_semantics = [#tpu.dimension_semantics<parallel>, #tpu.dimension_semantics<parallel>, #tpu.dimension_semantics<arbitrary>], iteration_bounds = array<i64: 1, 1, 1>, scalar_prefetch = 0 : i64, scratch_operands = 1 : i64, tpu.core_type = #tpu.core_type<tc>, window_params = [{transform_indices = @transform_0, window_bounds = array<i64: 16, 128>}, {transform_indices = @transform_1, window_bounds = array<i64: 128, 384>}, {transform_indices = @transform_2, window_bounds = array<i64: 1, 384>}, {transform_indices = @transform_3, window_bounds = array<i64: 16, 384>}]} {
    %c0_i32 = arith.constant 0 : i32
    %0 = arith.cmpi eq, %arg2, %c0_i32 : i32
    %1 = arith.extui %0 : i1 to i32
    %c0_i32_0 = arith.constant 0 : i32
    %2 = arith.cmpi ne, %1, %c0_i32_0 : i32
    scf.if %2 {
      %cst_10 = arith.constant 0.000000e+00 : f32
      %12 = vector.broadcast %cst_10 : f32 to vector<16x384xf32>
      %c0_11 = arith.constant 0 : index
      %c0_12 = arith.constant 0 : index
      %13 = vector.load %arg7[%c0_11, %c0_12] : memref<16x384xf32, #tpu.memory_space<vmem>>, vector<16x384xf32>
      tpu.vector_store %arg7[%c0_11, %c0_12], %12 {strides = array<i32>} : memref<16x384xf32, #tpu.memory_space<vmem>>, vector<16x384xf32>,
    } else {
    }
    %c0 = arith.constant 0 : index
    %c0_1 = arith.constant 0 : index
    %3 = vector.load %arg7[%c0, %c0_1] : memref<16x384xf32, #tpu.memory_space<vmem>>, vector<16x384xf32>
    %c0_2 = arith.constant 0 : index
    %c0_3 = arith.constant 0 : index
    %4 = vector.load %arg3[%c0_2, %c0_3] : memref<16x128xbf16, #tpu.memory_space<vmem>>, vector<16x128xbf16>
    %c0_4 = arith.constant 0 : index
    %c0_5 = arith.constant 0 : index
    %5 = vector.load %arg4[%c0_4, %c0_5] : memref<128x384xbf16, #tpu.memory_space<vmem>>, vector<128x384xbf16>
    %cst = arith.constant dense<0.000000e+00> : vector<16x384xf32>
    %6 = tpu.matmul %4, %5, %cst {dimension_numbers = #tpu.dot_dimension_numbers<[1], [0], [0], [1], [0, 0, 1, 1], [], []>} : vector<16x128xbf16>, vector<128x384xbf16>, vector<16x384xf32> -> vector<16x384xf32>
    %7 = arith.addf %3, %6 : vector<16x384xf32>
    %c0_6 = arith.constant 0 : index
    %c0_7 = arith.constant 0 : index
    %8 = vector.load %arg7[%c0_6, %c0_7] : memref<16x384xf32, #tpu.memory_space<vmem>>, vector<16x384xf32>
    tpu.vector_store %arg7[%c0_6, %c0_7], %7 {strides = array<i32>} : memref<16x384xf32, #tpu.memory_space<vmem>>, vector<16x384xf32>,
    %c0_i32_8 = arith.constant 0 : i32
    %9 = arith.cmpi eq, %arg2, %c0_i32_8 : i32
    %10 = arith.extui %9 : i1 to i32
    %c0_i32_9 = arith.constant 0 : i32
    %11 = arith.cmpi ne, %10, %c0_i32_9 : i32
    scf.if %11 {
      %c0_10 = arith.constant 0 : index
      %c0_11 = arith.constant 0 : index
      %12 = vector.load %arg7[%c0_10, %c0_11] : memref<16x384xf32, #tpu.memory_space<vmem>>, vector<16x384xf32>
      %c0_12 = arith.constant 0 : index
      %c0_13 = arith.constant 0 : index
      %13 = vector.load %arg5[%c0_12, %c0_13] : memref<1x384xf32, #tpu.memory_space<vmem>>, vector<1x384xf32>
      %14 = vector.broadcast %13 : vector<1x384xf32> to vector<16x384xf32>
      %15 = arith.addf %12, %14 : vector<16x384xf32>
      %16 = arith.truncf %15 : vector<16x384xf32> to vector<16x384xbf16>
      %c0_14 = arith.constant 0 : index
      %c0_15 = arith.constant 0 : index
      %17 = vector.load %arg6[%c0_14, %c0_15] : memref<16x384xbf16, #tpu.memory_space<vmem>>, vector<16x384xbf16>
      tpu.vector_store %arg6[%c0_14, %c0_15], %16 {strides = array<i32>} : memref<16x384xbf16, #tpu.memory_space<vmem>>, vector<16x384xbf16>,
    } else {
    }
    return
  }
  func.func @transform_0(%arg0: i32, %arg1: i32, %arg2: i32) -> (i32, i32) {
    %c0_i32 = arith.constant 0 : i32
    return %arg0, %arg2 : i32, i32
  }
  func.func @transform_1(%arg0: i32, %arg1: i32, %arg2: i32) -> (i32, i32) {
    %c0_i32 = arith.constant 0 : i32
    return %arg2, %arg1 : i32, i32
  }
  func.func @transform_2(%arg0: i32, %arg1: i32, %arg2: i32) -> (i32, i32) {
    %c0_i32 = arith.constant 0 : i32
    %c0_i32_0 = arith.constant 0 : i32
    return %c0_i32, %arg1 : i32, i32
  }
  func.func @transform_3(%arg0: i32, %arg1: i32, %arg2: i32) -> (i32, i32) {
    %c0_i32 = arith.constant 0 : i32
    return %arg0, %arg1 : i32, i32
  }
}

module attributes {stable_mosaic.version = 11 : i64} {
  func.func @_linear_add_ln_kernel(%arg0: i32, %arg1: i32, %arg2: memref<16x512xbf16, #tpu.memory_space<vmem>>, %arg3: memref<512x128xbf16, #tpu.memory_space<vmem>>, %arg4: memref<1x128xf32, #tpu.memory_space<vmem>>, %arg5: memref<16x128xbf16, #tpu.memory_space<vmem>>, %arg6: memref<1x128xf32, #tpu.memory_space<vmem>>, %arg7: memref<1x128xf32, #tpu.memory_space<vmem>>, %arg8: memref<16x128xbf16, #tpu.memory_space<vmem>>, %arg9: memref<16x128xf32, #tpu.memory_space<vmem>>) attributes {dimension_semantics = [#tpu.dimension_semantics<parallel>, #tpu.dimension_semantics<arbitrary>], iteration_bounds = array<i64: 1, 1>, scalar_prefetch = 0 : i64, scratch_operands = 1 : i64, tpu.core_type = #tpu.core_type<tc>, window_params = [{transform_indices = @transform_0, window_bounds = array<i64: 16, 512>}, {transform_indices = @transform_1, window_bounds = array<i64: 512, 128>}, {pipeline_mode = #tpu.pipeline_mode<synchronous>, transform_indices = @transform_2, window_bounds = array<i64: 1, 128>}, {transform_indices = @transform_3, window_bounds = array<i64: 16, 128>}, {pipeline_mode = #tpu.pipeline_mode<synchronous>, transform_indices = @transform_4, window_bounds = array<i64: 1, 128>}, {pipeline_mode = #tpu.pipeline_mode<synchronous>, transform_indices = @transform_5, window_bounds = array<i64: 1, 128>}, {transform_indices = @transform_6, window_bounds = array<i64: 16, 128>}]} {
    %c0_i32 = arith.constant 0 : i32
    %0 = arith.cmpi eq, %arg1, %c0_i32 : i32
    %1 = arith.extui %0 : i1 to i32
    %c0_i32_0 = arith.constant 0 : i32
    %2 = arith.cmpi ne, %1, %c0_i32_0 : i32
    scf.if %2 {
      %cst_10 = arith.constant 0.000000e+00 : f32
      %12 = vector.broadcast %cst_10 : f32 to vector<16x128xf32>
      %c0_11 = arith.constant 0 : index
      %c0_12 = arith.constant 0 : index
      %13 = vector.load %arg9[%c0_11, %c0_12] : memref<16x128xf32, #tpu.memory_space<vmem>>, vector<16x128xf32>
      tpu.vector_store %arg9[%c0_11, %c0_12], %12 {strides = array<i32>} : memref<16x128xf32, #tpu.memory_space<vmem>>, vector<16x128xf32>,
    } else {
    }
    %c0 = arith.constant 0 : index
    %c0_1 = arith.constant 0 : index
    %3 = vector.load %arg9[%c0, %c0_1] : memref<16x128xf32, #tpu.memory_space<vmem>>, vector<16x128xf32>
    %c0_2 = arith.constant 0 : index
    %c0_3 = arith.constant 0 : index
    %4 = vector.load %arg2[%c0_2, %c0_3] : memref<16x512xbf16, #tpu.memory_space<vmem>>, vector<16x512xbf16>
    %c0_4 = arith.constant 0 : index
    %c0_5 = arith.constant 0 : index
    %5 = vector.load %arg3[%c0_4, %c0_5] : memref<512x128xbf16, #tpu.memory_space<vmem>>, vector<512x128xbf16>
    %cst = arith.constant dense<0.000000e+00> : vector<16x128xf32>
    %6 = tpu.matmul %4, %5, %cst {dimension_numbers = #tpu.dot_dimension_numbers<[1], [0], [0], [1], [0, 0, 1, 1], [], []>} : vector<16x512xbf16>, vector<512x128xbf16>, vector<16x128xf32> -> vector<16x128xf32>
    %7 = arith.addf %3, %6 : vector<16x128xf32>
    %c0_6 = arith.constant 0 : index
    %c0_7 = arith.constant 0 : index
    %8 = vector.load %arg9[%c0_6, %c0_7] : memref<16x128xf32, #tpu.memory_space<vmem>>, vector<16x128xf32>
    tpu.vector_store %arg9[%c0_6, %c0_7], %7 {strides = array<i32>} : memref<16x128xf32, #tpu.memory_space<vmem>>, vector<16x128xf32>,
    %c0_i32_8 = arith.constant 0 : i32
    %9 = arith.cmpi eq, %arg1, %c0_i32_8 : i32
    %10 = arith.extui %9 : i1 to i32
    %c0_i32_9 = arith.constant 0 : i32
    %11 = arith.cmpi ne, %10, %c0_i32_9 : i32
    scf.if %11 {
      %c0_10 = arith.constant 0 : index
      %c0_11 = arith.constant 0 : index
      %12 = vector.load %arg9[%c0_10, %c0_11] : memref<16x128xf32, #tpu.memory_space<vmem>>, vector<16x128xf32>
      %c0_12 = arith.constant 0 : index
      %c0_13 = arith.constant 0 : index
      %13 = vector.load %arg4[%c0_12, %c0_13] : memref<1x128xf32, #tpu.memory_space<vmem>>, vector<1x128xf32>
      %14 = vector.broadcast %13 : vector<1x128xf32> to vector<16x128xf32>
      %15 = arith.addf %12, %14 : vector<16x128xf32>
      %c0_14 = arith.constant 0 : index
      %c0_15 = arith.constant 0 : index
      %16 = vector.load %arg5[%c0_14, %c0_15] : memref<16x128xbf16, #tpu.memory_space<vmem>>, vector<16x128xbf16>
      %17 = arith.extf %16 : vector<16x128xbf16> to vector<16x128xf32>
      %18 = arith.addf %15, %17 : vector<16x128xf32>
      %cst_16 = arith.constant dense<0.000000e+00> : vector<16xf32>
      %19 = vector.multi_reduction <add>, %18, %cst_16 [1] : vector<16x128xf32> to vector<16xf32>
      %20 = vector.shape_cast %19 : vector<16xf32> to vector<16x1xf32>
      %cst_17 = arith.constant 1.280000e+02 : f32
      %21 = vector.broadcast %cst_17 : f32 to vector<16x1xf32>
      %22 = arith.divf %20, %21 : vector<16x1xf32>
      %23 = vector.broadcast %22 : vector<16x1xf32> to vector<16x128xf32>
      %24 = arith.subf %18, %23 : vector<16x128xf32>
      %25 = arith.mulf %24, %24 : vector<16x128xf32>
      %cst_18 = arith.constant dense<0.000000e+00> : vector<16xf32>
      %26 = vector.multi_reduction <add>, %25, %cst_18 [1] : vector<16x128xf32> to vector<16xf32>
      %27 = vector.shape_cast %26 : vector<16xf32> to vector<16x1xf32>
      %cst_19 = arith.constant 1.280000e+02 : f32
      %28 = vector.broadcast %cst_19 : f32 to vector<16x1xf32>
      %29 = arith.divf %27, %28 : vector<16x1xf32>
      %30 = vector.broadcast %22 : vector<16x1xf32> to vector<16x128xf32>
      %31 = arith.subf %18, %30 : vector<16x128xf32>
      %cst_20 = arith.constant 9.99999996E-13 : f32
      %32 = vector.broadcast %cst_20 : f32 to vector<16x1xf32>
      %33 = arith.addf %29, %32 : vector<16x1xf32>
      %34 = math.rsqrt %33 : vector<16x1xf32>
      %35 = vector.broadcast %34 : vector<16x1xf32> to vector<16x128xf32>
      %36 = arith.mulf %31, %35 : vector<16x128xf32>
      %c0_21 = arith.constant 0 : index
      %c0_22 = arith.constant 0 : index
      %37 = vector.load %arg6[%c0_21, %c0_22] : memref<1x128xf32, #tpu.memory_space<vmem>>, vector<1x128xf32>
      %38 = vector.broadcast %37 : vector<1x128xf32> to vector<16x128xf32>
      %39 = arith.mulf %36, %38 : vector<16x128xf32>
      %c0_23 = arith.constant 0 : index
      %c0_24 = arith.constant 0 : index
      %40 = vector.load %arg7[%c0_23, %c0_24] : memref<1x128xf32, #tpu.memory_space<vmem>>, vector<1x128xf32>
      %41 = vector.broadcast %40 : vector<1x128xf32> to vector<16x128xf32>
      %42 = arith.addf %39, %41 : vector<16x128xf32>
      %43 = arith.truncf %42 : vector<16x128xf32> to vector<16x128xbf16>
      %c0_25 = arith.constant 0 : index
      %c0_26 = arith.constant 0 : index
      %44 = vector.load %arg8[%c0_25, %c0_26] : memref<16x128xbf16, #tpu.memory_space<vmem>>, vector<16x128xbf16>
      tpu.vector_store %arg8[%c0_25, %c0_26], %43 {strides = array<i32>} : memref<16x128xbf16, #tpu.memory_space<vmem>>, vector<16x128xbf16>,
    } else {
    }
    return
  }
  func.func @transform_0(%arg0: i32, %arg1: i32) -> (i32, i32) {
    %c0_i32 = arith.constant 0 : i32
    return %arg0, %arg1 : i32, i32
  }
  func.func @transform_1(%arg0: i32, %arg1: i32) -> (i32, i32) {
    %c0_i32 = arith.constant 0 : i32
    %c0_i32_0 = arith.constant 0 : i32
    return %arg1, %c0_i32 : i32, i32
  }
  func.func @transform_2(%arg0: i32, %arg1: i32) -> (i32, i32) {
    %c0_i32 = arith.constant 0 : i32
    %c0_i32_0 = arith.constant 0 : i32
    %c0_i32_1 = arith.constant 0 : i32
    return %c0_i32, %c0_i32_0 : i32, i32
  }
  func.func @transform_3(%arg0: i32, %arg1: i32) -> (i32, i32) {
    %c0_i32 = arith.constant 0 : i32
    %c0_i32_0 = arith.constant 0 : i32
    return %arg0, %c0_i32 : i32, i32
  }
  func.func @transform_4(%arg0: i32, %arg1: i32) -> (i32, i32) {
    %c0_i32 = arith.constant 0 : i32
    %c0_i32_0 = arith.constant 0 : i32
    %c0_i32_1 = arith.constant 0 : i32
    return %c0_i32, %c0_i32_0 : i32, i32
  }
  func.func @transform_5(%arg0: i32, %arg1: i32) -> (i32, i32) {
    %c0_i32 = arith.constant 0 : i32
    %c0_i32_0 = arith.constant 0 : i32
    %c0_i32_1 = arith.constant 0 : i32
    return %c0_i32, %c0_i32_0 : i32, i32
  }
  func.func @transform_6(%arg0: i32, %arg1: i32) -> (i32, i32) {
    %c0_i32 = arith.constant 0 : i32
    %c0_i32_0 = arith.constant 0 : i32
    return %arg0, %c0_i32 : i32, i32
  }
}

module attributes {stable_mosaic.version = 11 : i64} {
  func.func @_pool_head_kernel(%arg0: memref<2x8x128xbf16, #tpu.memory_space<vmem>>, %arg1: memref<1x128xf32, #tpu.memory_space<vmem>>, %arg2: memref<1x1xf32, #tpu.memory_space<vmem>>, %arg3: memref<2x1xf32, #tpu.memory_space<vmem>>) attributes {dimension_semantics = [], scalar_prefetch = 0 : i64, scratch_operands = 0 : i64, tpu.core_type = #tpu.core_type<tc>} {
    %c0 = arith.constant 0 : index
    %c0_0 = arith.constant 0 : index
    %c0_1 = arith.constant 0 : index
    %0 = vector.load %arg0[%c0, %c0_0, %c0_1] : memref<2x8x128xbf16, #tpu.memory_space<vmem>>, vector<2x8x128xbf16>
    %1 = arith.extf %0 : vector<2x8x128xbf16> to vector<2x8x128xf32>
    %cst = arith.constant dense<0.000000e+00> : vector<2x128xf32>
    %2 = vector.multi_reduction <add>, %1, %cst [1] : vector<2x8x128xf32> to vector<2x128xf32>
    %cst_2 = arith.constant 1.250000e-01 : f32
    %3 = vector.broadcast %cst_2 : f32 to vector<2x128xf32>
    %4 = arith.mulf %2, %3 : vector<2x128xf32>
    %c0_3 = arith.constant 0 : index
    %c0_4 = arith.constant 0 : index
    %5 = vector.load %arg1[%c0_3, %c0_4] : memref<1x128xf32, #tpu.memory_space<vmem>>, vector<1x128xf32>
    %6 = vector.broadcast %5 : vector<1x128xf32> to vector<2x128xf32>
    %7 = arith.mulf %4, %6 : vector<2x128xf32>
    %cst_5 = arith.constant dense<0.000000e+00> : vector<2xf32>
    %8 = vector.multi_reduction <add>, %7, %cst_5 [1] : vector<2x128xf32> to vector<2xf32>
    %9 = vector.shape_cast %8 : vector<2xf32> to vector<2x1xf32>
    %c0_6 = arith.constant 0 : index
    %c0_7 = arith.constant 0 : index
    %10 = vector.load %arg2[%c0_6, %c0_7] : memref<1x1xf32, #tpu.memory_space<vmem>>, vector<1x1xf32>
    %11 = vector.broadcast %10 : vector<1x1xf32> to vector<2x1xf32>
    %12 = arith.addf %9, %11 : vector<2x1xf32>
    %c0_8 = arith.constant 0 : index
    %c0_9 = arith.constant 0 : index
    %13 = vector.load %arg3[%c0_8, %c0_9] : memref<2x1xf32, #tpu.memory_space<vmem>>, vector<2x1xf32>
    tpu.vector_store %arg3[%c0_8, %c0_9], %12 {strides = array<i32>} : memref<2x1xf32, #tpu.memory_space<vmem>>, vector<2x1xf32>,
    return
  }
}

</mosaic_0001>

<bundles_post_ra>
// kernel: bert_class_forward.12
= control target key start
LH: loop header
LB: loop body
LE: loop exit
PB: predicated region body
PF: predicated region fallthrough
CT: control target
= control target key end

     0   :  { %v97_v2 = vmov 128.0   ;;  %s133_s0 = inlined_call_operand.vmem [shape: f32[16,128], index: 0, kind: input, shape index: {}]   ;;  %s134_s1 = inlined_call_operand.vmem [shape: f32[1,128], index: 1, kind: input, shape index: {}]   ;;  %s135_s2 = inlined_call_operand.vmem [shape: f32[1,128], index: 2, kind: input, shape index: {}]   ;;  %s136_s3 = inlined_call_operand.vmem [shape: bf16[16,128], index: 3, kind: output, shape index: {}]  }
   0x1   :  { %v14_v0 = vld [vmem:[%s133_s0] sm:$0xff]  ;;  %v15_v1 = vld [vmem:[%s133_s0 + $0x8] sm:$0xff]  ;;  %91 = vrcp.f32 %v97_v2 }
   0x2   :  { %16 = vadd.xlane.f32.xlu0 %v14_v0  ;;  %v89_v35 = vld [vmem:[%s134_s1] ss:$0 sm:$0xff] }
   0x3   :  { %v90_v39 = vld [vmem:[%s135_s2] ss:$0 sm:$0xff] }
   0x7   :  { %v92_v3 = vpop.eup %91 }
   0x8   :  { %v21_v4 = vmul.f32 128.0, %v92_v3  ;;  %vm25_vm0 = vweird.f32 %v92_v3 }
   0xa   :  { %18 = vadd.xlane.f32.xlu0 %v15_v1  ;;  %v22_v5 = vsub.f32 1.0, %v21_v4 }
   0xc   :  { %v23_v6 = vmul.f32 %v92_v3, %v22_v5 }
   0xe   :  { %v24_v7 = vadd.f32 %v92_v3, %v23_v6 }
  0x10   :  { %v26_v8 = vsel %vm25_vm0, %v92_v3, %v24_v7 }
  0x75   :  { %v17_v9 = vpop.xlane.xlu0 %16 }
  0x76   :  { %v27_v10 = vmul.f32 %v26_v8, %v17_v9 }
  0x78   :  { %v29_v11 = vsub.f32 %v14_v0, %v27_v10 }
  0x7a   :  { %v31_v12 = vmul.f32 %v29_v11, %v29_v11 }
  0x7c   :  { %33 = vadd.xlane.f32.xlu1 %v31_v12 }
  0x7d   :  { %v19_v13 = vpop.xlane.xlu0 %18 }
  0x7e   :  { %v28_v14 = vmul.f32 %v26_v8, %v19_v13 }
  0x80   :  { %v30_v15 = vsub.f32 %v15_v1, %v28_v14 }
  0x82   :  { %v32_v16 = vmul.f32 %v30_v15, %v30_v15 }
  0x84   :  { %35 = vadd.xlane.f32.xlu1 %v32_v16 }
  0xef   :  { %v34_v17 = vpop.xlane.xlu1 %33 }
  0xf0   :  { %v37_v18 = vmul.f32 %v34_v17, %v26_v8 }
  0xf2   :  { %v39_v19 = vadd.f32 1e-12, %v37_v18 }
  0xf4   :  { %93 = vrsqrt.f32 %v39_v19  ;;  %vm47_vm2 = vweird.f32 %v39_v19 }
  0xf7   :  { %v36_v20 = vpop.xlane.xlu1 %35 }
  0xf8   :  { %v38_v21 = vmul.f32 %v36_v20, %v26_v8 }
  0xfa   :  { %v94_v22 = vpop.eup %93  ;;  %v40_v23 = vadd.f32 1e-12, %v38_v21 }
  0xfb   :  { %v42_v24 = vmul.f32 %v94_v22, %v39_v19  ;;  %vm48_vm1 = vweird.f32 %v94_v22 }
  0xfc   :  { %95 = vrsqrt.f32 %v40_v23  ;;  %vm49_vm3 = vmor %vm47_vm2, %vm48_vm1  ;;  %vm57_vm5 = vweird.f32 %v40_v23 }
  0xfd   :  { %v43_v25 = vmul.f32 %v94_v22, %v42_v24 }
  0xff   :  { %v44_v26 = vmul.f32 0.5, %v43_v25 }
 0x101   :  { %v45_v27 = vsub.f32 1.5, %v44_v26 }
 0x102   :  { %v96_v28 = vpop.eup %95 }
 0x103   :  { %v46_v29 = vmul.f32 %v94_v22, %v45_v27  ;;  %v52_v30 = vmul.f32 %v96_v28, %v40_v23  ;;  %vm58_vm4 = vweird.f32 %v96_v28 }
 0x104   :  { %vm59_vm6 = vmor %vm57_vm5, %vm58_vm4 }
 0x105   :  { %v53_v31 = vmul.f32 %v96_v28, %v52_v30  ;;  %v50_v32 = vsel %vm49_vm3, %v94_v22, %v46_v29 }
 0x106   :  { %v61_v36 = vmul.f32 %v50_v32, %v29_v11 }
 0x107   :  { %v54_v33 = vmul.f32 0.5, %v53_v31 }
 0x108   :  { %v67_v40 = vmul.f32 %v89_v35, %v61_v36 }
 0x109   :  { %v55_v34 = vsub.f32 1.5, %v54_v33 }
 0x10a   :  { %v73_v43 = vadd.f32 %v90_v39, %v67_v40 }
 0x10b   :  { %v56_v37 = vmul.f32 %v96_v28, %v55_v34 }
 0x10d   :  { %v60_v38 = vsel %vm59_vm6, %v96_v28, %v56_v37 }
 0x10e   :  { %v62_v41 = vmul.f32 %v60_v38, %v30_v15 }
 0x110   :  { %v68_v42 = vmul.f32 %v89_v35, %v62_v41 }
 0x112   :  { %v74_v44 = vadd.f32 %v90_v39, %v68_v42 }
 0x114   :  { %v86_v45 = vpack.c.bf16 %v74_v44, %v73_v43 }
 0x116   :  { %87 = vst [vmem:[%s136_s3] sm:$0xff] %v86_v45  }

// kernel: bert_class_forward.15
= control target key start
LH: loop header
LB: loop body
LE: loop exit
PB: predicated region body
PF: predicated region fallthrough
CT: control target
= control target key end

     0   :  { %11 = vsyncpa [#allocation4], 0  ;;  %s315_s24 = smov [#allocation3]   ;;  %s316_s26 = smov 64   ;;  %s375_s0 = inlined_call_operand.vmem [shape: bf16[16,128], index: 0, kind: input, shape index: {}]   ;;  %s376_s1 = inlined_call_operand.hbm [shape: bf16[128,128], index: 1, kind: input, shape index: {}]   ;;  %s377_s2 = inlined_call_operand.vmem [shape: f32[1,128], index: 2, kind: input, shape index: {}]   ;;  %s378_s3 = inlined_call_operand.vmem [shape: bf16[16,128], index: 3, kind: input, shape index: {}]   ;;  %s379_s4 = inlined_call_operand.vmem [shape: f32[1,128], index: 4, kind: input, shape index: {}]   ;;  %s380_s5 = inlined_call_operand.vmem [shape: f32[1,128], index: 5, kind: input, shape index: {}]   ;;  %s381_s6 = inlined_call_operand.vmem [shape: bf16[16,128], index: 6, kind: output, shape index: {}]  }
   0x1   :  { %s18_s23 = sshll.u32 %s376_s1, 4  ;;  %s20_s25 = sshll.u32 %s315_s24, 4  ;;  %s19_s23 = int_to_ptr.hbm [resolvable:$true] %s18_s23  ;;  %s21_s25 = int_to_ptr.vmem [resolvable:$true] %s20_s25 }
   0x2   :  { %s317_s27 = smov 4  }
   0x3   :  { %26 = dma.hbm_to_vmem [thread:$0]  %s19_s23, 1024, %s21_s25, [#allocation4], %s316_s26, %s316_s26, %s317_s27  }
   0x4   :  { %313 = dma.done.wait [#allocation4], 1024  }
   0x5   :  { %314 = vsyncadd [#allocation4], 4294966272  ;;  %v266_v0 = vld [vmem:[#allocation3 + $0x38] sm:$0xff]  ;;  %v265_v1 = vld [vmem:[#allocation3 + $0x30] sm:$0xff]  ;;  %v318_v19 = vmov 128.0  }
   0x6   :  { %119 = vmatpush.bf16.msra.mxu0 %v266_v0  ;;  %v264_v2 = vld [vmem:[#allocation3 + $0x28] sm:$0xff]  ;;  %v263_v3 = vld [vmem:[#allocation3 + $0x20] sm:$0xff]  ;;  %v262_v4 = vld [vmem:[#allocation3 + $0x18] sm:$0xff]  ;;  %283 = vrcp.f32 %v318_v19 }
   0x7   :  { %v261_v5 = vld [vmem:[#allocation3 + $0x10] sm:$0xff]  ;;  %v260_v6 = vld [vmem:[#allocation3 + $0x8] sm:$0xff]  ;;  %v259_v7 = vld [vmem:[#allocation3] sm:$0xff] }
   0x8   :  { %v258_v8 = vld [vmem:[%s375_s0] sm:$0xff] }
   0x9   :  { %v268_v9 = vld [vmem:[%s378_s3] sm:$0xff]  }
   0xa   :  { %120 = vmatpush.bf16.msra.mxu0 %v265_v1  ;;  %v280_v10 = vld [vmem:[%s377_s2] ss:$0 sm:$0xff]  ;;  %v269_v11 = vunpack.c.l.bf16 %v268_v9  ;;  %v270_v15 = vunpack.c.h.bf16 %v268_v9 }
   0xb   :  { %v281_v52 = vld [vmem:[%s379_s4] ss:$0 sm:$0xff] }
   0xc   :  { %v284_v20 = vpop.eup %283  ;;  %v282_v56 = vld [vmem:[%s380_s5] ss:$0 sm:$0xff] }
   0xd   :  { %v159_v21 = vmul.f32 128.0, %v284_v20  ;;  %vm163_vm0 = vweird.f32 %v284_v20 }
   0xe   :  { %121 = vmatpush.bf16.msra.mxu0 %v264_v2 }
   0xf   :  { %v160_v22 = vsub.f32 1.0, %v159_v21 }
  0x11   :  { %v161_v23 = vmul.f32 %v284_v20, %v160_v22 }
  0x12   :  { %122 = vmatpush.bf16.msra.mxu0 %v263_v3 }
  0x13   :  { %v162_v24 = vadd.f32 %v284_v20, %v161_v23 }
  0x15   :  { %v164_v25 = vsel %vm163_vm0, %v284_v20, %v162_v24 }
  0x16   :  { %123 = vmatpush.bf16.msra.mxu0 %v262_v4 }
  0x1a   :  { %124 = vmatpush.bf16.msra.mxu0 %v261_v5 }
  0x1e   :  { %125 = vmatpush.bf16.msra.mxu0 %v260_v6 }
  0x22   :  { %126 = vmatpush.bf16.msra.mxu0 %v259_v7 }
  0x25   :  { %127 = vmatmul.bf16.vlgmr.msra.gmra.mxu0 %v258_v8 }
  0xa2   :  { %v128_v12 = vpop.f32.mrf.mxu0 }
  0xa3   :  { %v146_v13 = vadd.f32 %v280_v10, %v128_v12 }
  0xa5   :  { %v152_v14 = vadd.f32 %v269_v11, %v146_v13 }
  0xa7   :  { %154 = vadd.xlane.f32.xlu0 %v152_v14 }
  0xaa   :  { %v130_v16 = vpop.f32.mrf.mxu0 }
  0xab   :  { %v147_v17 = vadd.f32 %v280_v10, %v130_v16 }
  0xad   :  { %v153_v18 = vadd.f32 %v270_v15, %v147_v17 }
  0xaf   :  { %156 = vadd.xlane.f32.xlu0 %v153_v18 }
 0x11a   :  { %v155_v26 = vpop.xlane.xlu0 %154 }
 0x11b   :  { %v165_v27 = vmul.f32 %v164_v25, %v155_v26 }
 0x11d   :  { %v167_v28 = vsub.f32 %v152_v14, %v165_v27 }
 0x11f   :  { %v169_v29 = vmul.f32 %v167_v28, %v167_v28 }
 0x121   :  { %171 = vadd.xlane.f32.xlu1 %v169_v29 }
 0x122   :  { %v157_v30 = vpop.xlane.xlu0 %156 }
 0x123   :  { %v166_v31 = vmul.f32 %v164_v25, %v157_v30 }
 0x125   :  { %v168_v32 = vsub.f32 %v153_v18, %v166_v31 }
 0x127   :  { %v170_v33 = vmul.f32 %v168_v32, %v168_v32 }
 0x129   :  { %173 = vadd.xlane.f32.xlu1 %v170_v33 }
 0x194   :  { %v172_v34 = vpop.xlane.xlu1 %171 }
 0x195   :  { %v175_v35 = vmul.f32 %v172_v34, %v164_v25 }
 0x197   :  { %v177_v36 = vadd.f32 1e-12, %v175_v35 }
 0x199   :  { %285 = vrsqrt.f32 %v177_v36  ;;  %vm185_vm2 = vweird.f32 %v177_v36 }
 0x19c   :  { %v174_v37 = vpop.xlane.xlu1 %173 }
 0x19d   :  { %v176_v38 = vmul.f32 %v174_v37, %v164_v25 }
 0x19f   :  { %v286_v39 = vpop.eup %285  ;;  %v178_v40 = vadd.f32 1e-12, %v176_v38 }
 0x1a0   :  { %v180_v41 = vmul.f32 %v286_v39, %v177_v36  ;;  %vm186_vm1 = vweird.f32 %v286_v39 }
 0x1a1   :  { %287 = vrsqrt.f32 %v178_v40  ;;  %vm187_vm3 = vmor %vm185_vm2, %vm186_vm1  ;;  %vm195_vm5 = vweird.f32 %v178_v40 }
 0x1a2   :  { %v181_v42 = vmul.f32 %v286_v39, %v180_v41 }
 0x1a4   :  { %v182_v43 = vmul.f32 0.5, %v181_v42 }
 0x1a6   :  { %v183_v44 = vsub.f32 1.5, %v182_v43 }
 0x1a7   :  { %v288_v45 = vpop.eup %287 }
 0x1a8   :  { %v184_v46 = vmul.f32 %v286_v39, %v183_v44  ;;  %v190_v47 = vmul.f32 %v288_v45, %v178_v40  ;;  %vm196_vm4 = vweird.f32 %v288_v45 }
 0x1a9   :  { %vm197_vm6 = vmor %vm195_vm5, %vm196_vm4 }
 0x1aa   :  { %v191_v48 = vmul.f32 %v288_v45, %v190_v47  ;;  %v188_v49 = vsel %vm187_vm3, %v286_v39, %v184_v46 }
 0x1ab   :  { %v199_v53 = vmul.f32 %v188_v49, %v167_v28 }
 0x1ac   :  { %v192_v50 = vmul.f32 0.5, %v191_v48 }
 0x1ad   :  { %v205_v57 = vmul.f32 %v281_v52, %v199_v53 }
 0x1ae   :  { %v193_v51 = vsub.f32 1.5, %v192_v50 }
 0x1af   :  { %v211_v60 = vadd.f32 %v282_v56, %v205_v57 }
 0x1b0   :  { %v194_v54 = vmul.f32 %v288_v45, %v193_v51 }
 0x1b2   :  { %v198_v55 = vsel %vm197_vm6, %v288_v45, %v194_v54 }
 0x1b3   :  { %v200_v58 = vmul.f32 %v198_v55, %v168_v32 }
 0x1b5   :  { %v206_v59 = vmul.f32 %v281_v52, %v200_v58 }
 0x1b7   :  { %v212_v61 = vadd.f32 %v282_v56, %v206_v59 }
 0x1b9   :  { %v274_v62 = vpack.c.bf16 %v212_v61, %v211_v60 }
 0x1bb   :  { %275 = vst [vmem:[%s381_s6] sm:$0xff] %v274_v62  }
 0x1bc   :  { %221 = vsyncpa [#allocation4], 1 }

// kernel: bert_class_forward.14
= control target key start
LH: loop header
LB: loop body
LE: loop exit
PB: predicated region body
PF: predicated region fallthrough
CT: control target
= control target key end

     0   :  { %s555_s9 = smov 0   ;;  %s625_s0 = inlined_call_operand.vmem [shape: bf16[2,8,384], index: 0, kind: input, shape index: {}]   ;;  %s626_s1 = inlined_call_operand.vmem [shape: f32[2,1,8], index: 1, kind: input, shape index: {}]   ;;  %s627_s2 = inlined_call_operand.vmem [shape: bf16[2,8,128], index: 2, kind: output, shape index: {}]  }
   0x1 LB: > { %s483_s10 = sadd.s32 4294967295, %s535_s9   ;;  %p487_p0 = scmp.ge.s32.totalorder %s535_s9, 1  ;;  %s535_s9 = sphi %s555_s9, %s12_s9  }
   0x2   : > { %p120_p1 = scmp.lt.s32.totalorder %s535_s9, 3 }
   0x4   : > { %p121_p2 = pnand %p487_p0, %p120_p1 }
   0x5   : > { %p144_p3 = scmp.lt.s32.totalorder (!%p121_p2), %s483_s10, 1  ;;  %s537_s15 = smov (!%p121_p2), 96  }
   0x6   : > { %124 = sbr.rel (%p121_p2) target bundleno = 834 (0x342), region = 28  ;;  %s538_s16 = smov (!%p121_p2), 32  }
   0x7   : > { %s539_s20 = smov (!%p121_p2), 64  }
   0xb   : > { %s629_s10 = smov (!%p144_p3, %s483_s10), 1  ;;  %vm161_vm0 = vcmask 261120   ;;  %vm186_vm1 = vcmask 64512   ;;  %vm200_vm2 = vcmask 1043456   ;;  %vm415_vm3 = vcmask 523264  }
   0xc   : > { %s500_s11 = smul.u32 12, %s629_s10  ;;  %s151_s19 = scalar_lea.vmem %s626_s1, %s629_s10  ;;  %vm417_vm4 = vcmask 785408  }
   0xd   : > { %v512_v10 = vld [vmem:[%s151_s19] ss:$0 sm:$0xff]  ;;  %s489_s21 = sshll.u32 %s629_s10, 2 }
   0xe   : > { %s569_s14 = scalar_lea.vmem %s625_s0, %s500_s11  ;;  %s155_s24 = scalar_lea.vmem %s627_s2, %s489_s21 }
   0xf   : > { %v159_v0 = vld [vmem:[%s569_s14 + $0x4] sm:$0xf]  ;;  %v158_v1 = vld [vmem:[%s569_s14] sm:$0xf]  ;;  %v160_v18 = vld [vmem:[%s569_s14 + $0x8] sm:$0xf] }
  0x10   : > { %v166_v2 = vsel %vm161_vm0, %v159_v0, 0  ;;  %v225_v3 = vunpack.c.l.b16 %v159_v0  ;;  %v220_v4 = vunpack.c.l.b16 %v158_v1  ;;  %v202_v19 = vsel %vm200_vm2, %v160_v18, 0 }
  0x11   : > { %175 = vmatpush.bf16.xpose.msra.mxu0 %v166_v2  ;;  %v261_v20 = vunpack.c.l.b16 %v160_v18  ;;  %211 = vmatpush.bf16.msra.mxu1 %v202_v19 }
  0x12   : > { %v226_v5 = vpack.c.b16 %v225_v3, %v225_v3  ;;  %v221_v6 = vpack.c.b16 %v220_v4, %v220_v4 }
  0x13   : > { %v262_v21 = vpack.c.b16 %v261_v20, %v261_v20 }
  0x14   : > { %222 = vrot.lane.b32.xlu1 %v221_v6, %s537_s15  ;;  %346 = vrot.lane.b32.xlu2 %v226_v5, %s538_s16 }
  0x18   : > { %490 = vmatmul.msk.bf16.vlgmr.msra.gmra.mxu0 %vm161_vm0, %v158_v1 }
  0x1c   : > { %288 = vrot.lane.b32.xlu1 %v226_v5, %s539_s20  ;;  %286 = vrot.lane.b32.xlu2 %v221_v6, %s539_s20 }
  0x24   : > { %344 = vrot.lane.b32.xlu1 %v221_v6, %s538_s16 }
  0x2c   : > { %263 = vrot.lane.b32.xlu1 %v262_v21, %s537_s15 }
  0x6e   : > { %v347_v8 = vpop.permute.xlu2 %346 }
  0x6f   : > { %v352_v9 = vsel %vm161_vm0, %v347_v8, 0 }
  0x70   : > { %361 = vmatpush.bf16.xpose.msrb.mxu0 %v352_v9 }
  0x76   : > { %v287_v35 = vpop.permute.xlu2 %286 }
  0x86   : > { %v223_v7 = vpop.permute.xlu1 %222 }
  0x8e   : > { %v289_v13 = vpop.permute.xlu1 %288 }
  0x8f   : > { %v294_v22 = vsel %vm161_vm0, %v289_v13, 0 }
  0x90   : > { %303 = vmatpush.bf16.xpose.msrb.mxu1 %v294_v22 }
  0x95   : > { %v177_v11 = vpop.f32.mrf.mxu0 }
  0x96   : > { %v181_v12 = vmul.f32 0.17677669, %v177_v11  ;;  %v345_v17 = vpop.permute.xlu1 %344 }
  0x97   : > { %496 = vmatmul.msk.bf16.vlgmr.msrb.gmra.mxu0 %vm161_vm0, %v345_v17 }
  0x98   : > { %v185_v14 = vadd.f32 %v512_v10, %v181_v12 }
  0x9a   : > { %v187_v15 = vsel %vm186_vm1, %v185_v14, -inf }
  0x9b   : > { %188 = vmax.xlane.f32.xlu0 %v187_v15 }
  0x9d   : > { %v179_v16 = vpop.f32.mrf.mxu0 }
  0x9e   : > { %v264_v49 = vpop.permute.xlu1 %263 }
  0x9f   : > { %v269_v50 = vsel %vm200_vm2, %v264_v49, 0 }
  0xa0   : > { %278 = vmatpush.bf16.msra.mxu3 %v269_v50 }
  0xaf   : > { %227 = vrot.lane.b32.xlu0 %v226_v5, %s537_s15 }
 0x10e   : > { %v189_v23 = vpop.xlane.xlu0 %188 }
 0x10f   : > { %v190_v24 = vsub.f32 %v185_v14, %v189_v23 }
 0x111   : > { %v191_v25 = vmul.f32 1.442695, %v190_v24 }
 0x113   : > { %513 = vpow2.f32 %v191_v25 }
 0x114   : > { %v363_v28 = vpop.f32.mrf.mxu0 }
 0x115   : > { %v367_v29 = vmul.f32 0.17677669, %v363_v28 }
 0x117   : > { %v368_v30 = vadd.f32 %v512_v10, %v367_v29 }
 0x119   : > { %v514_v26 = vpop.eup %513  ;;  %v369_v33 = vsel %vm186_vm1, %v368_v30, -inf }
 0x11a   : > { %v196_v27 = vpack.c.bf16 %v514_v26, %v514_v26  ;;  %370 = vmax.xlane.f32.xlu1 %v369_v33  ;;  %v193_v48 = vsel %vm186_vm1, %v514_v26, 0.0 }
 0x11c   : > { %491 = vmatmul.msk.bf16.vlgmr.msra.gmra.mxu1 %vm186_vm1, %v196_v27  ;;  %v365_v34 = vpop.f32.mrf.mxu0 }
 0x121   : > { %v228_v31 = vpop.permute.xlu0 %227 }
 0x122   : > { %v233_v32 = vsel %vm161_vm0, %v228_v31, 0 }
 0x123   : > { %242 = vmatpush.bf16.xpose.msra.mxu2 %v233_v32 }
 0x12a   : > { %492 = vmatmul.msk.bf16.vlgmr.msra.gmra.mxu2 %vm161_vm0, %v223_v7 }
 0x12c   : > { %494 = vmatmul.msk.bf16.vlgmr.msrb.gmra.mxu1 %vm161_vm0, %v287_v35 }
 0x18d   : > { %v371_v53 = vpop.xlane.xlu1 %370 }
 0x18e   : > { %v372_v56 = vsub.f32 %v368_v30, %v371_v53 }
 0x190   : > { %v373_v59 = vmul.f32 1.442695, %v372_v56 }
 0x199   : > { %v597_v36 = vpop.f32.mrf.mxu1 }
 0x1a1   : > { %v215_v37 = vpop.f32.mrf.mxu1 }
 0x1a9   : > { %v305_v38 = vpop.f32.mrf.mxu1 }
 0x1aa   : > { %v309_v39 = vmul.f32 0.17677669, %v305_v38 }
 0x1ac   : > { %v310_v40 = vadd.f32 %v512_v10, %v309_v39 }
 0x1ad   : > { %v244_v41 = vpop.f32.mrf.mxu2 }
 0x1ae   : > { %v248_v42 = vmul.f32 0.17677669, %v244_v41  ;;  %v311_v43 = vsel %vm186_vm1, %v310_v40, -inf }
 0x1af   : > { %312 = vmax.xlane.f32.xlu0 %v311_v43 }
 0x1b0   : > { %v249_v44 = vadd.f32 %v512_v10, %v248_v42 }
 0x1b1   : > { %v307_v45 = vpop.f32.mrf.mxu1 }
 0x1b2   : > { %v250_v46 = vsel %vm186_vm1, %v249_v44, -inf }
 0x1b3   : > { %251 = vmax.xlane.f32.xlu2 %v250_v46 }
 0x1b5   : > { %v246_v47 = vpop.f32.mrf.mxu2 }
 0x1c3   : > { %379 = vrot.lane.b32.xlu0 %v262_v21, %s538_s16 }
 0x1cb   : > { %321 = vrot.lane.b32.xlu2 %v262_v21, %s539_s20 }
 0x1ed   : > { %194 = vadd.xlane.f32.xlu0 %v193_v48 }
 0x222   : > { %v313_v51 = vpop.xlane.xlu0 %312 }
 0x223   : > { %v314_v52 = vsub.f32 %v310_v40, %v313_v51 }
 0x225   : > { %v315_v54 = vmul.f32 1.442695, %v314_v52 }
 0x226   : > { %v252_v55 = vpop.xlane.xlu2 %251 }
 0x227   : > { %515 = vpow2.f32 %v315_v54  ;;  %v253_v57 = vsub.f32 %v249_v44, %v252_v55 }
 0x229   : > { %v254_v58 = vmul.f32 1.442695, %v253_v57 }
 0x22b   : > { %517 = vpow2.f32 %v254_v58 }
 0x22c   : > { %519 = vpow2.f32 %v373_v59 }
 0x22d   : > { %v516_v60 = vpop.eup %515 }
 0x22e   : > { %v317_v61 = vsel %vm186_vm1, %v516_v60, 0.0  ;;  %v322_v62 = vpop.permute.xlu2 %321  ;;  %v320_v8 = vpack.c.bf16 %v516_v60, %v516_v60 }
 0x22f   : > { %318 = vadd.xlane.f32.xlu2 %v317_v61  ;;  %v327_v63 = vsel %vm200_vm2, %v322_v62, 0 }
 0x230   : > { %336 = vmatpush.bf16.msrb.mxu3 %v327_v63 }
 0x231   : > { %v518_v0 = vpop.eup %517 }
 0x232   : > { %v256_v1 = vsel %vm186_vm1, %v518_v0, 0.0  ;;  %v259_v2 = vpack.c.bf16 %v518_v0, %v518_v0  ;;  %v520_v3 = vpop.eup %519 }
 0x233   : > { %257 = vadd.xlane.f32.xlu1 %v256_v1  ;;  %v378_v6 = vpack.c.bf16 %v520_v3, %v520_v3  ;;  %v375_v7 = vsel %vm186_vm1, %v520_v3, 0.0 }
 0x234   : > { %493 = vmatmul.msk.bf16.vlgmr.msra.gmra.mxu3 %vm186_vm1, %v259_v2 }
 0x235   : > { %v380_v4 = vpop.permute.xlu0 %379 }
 0x236   : > { %v385_v5 = vsel %vm200_vm2, %v380_v4, 0 }
 0x237   : > { %394 = vmatpush.bf16.msrb.mxu2 %v385_v5 }
 0x23a   : > { %497 = vmatmul.msk.bf16.vlgmr.msrb.gmra.mxu2 %vm186_vm1, %v378_v6 }
 0x23b   : > { %376 = vadd.xlane.f32.xlu1 %v375_v7 }
 0x244   : > { %495 = vmatmul.msk.bf16.vlgmr.msrb.gmra.mxu3 %vm186_vm1, %v320_v8 }
 0x260   : > { %v195_v24 = vpop.xlane.xlu0 %194 }
 0x2a2   : > { %v319_v16 = vpop.xlane.xlu2 %318 }
 0x2a6   : > { %v258_v9 = vpop.xlane.xlu1 %257 }
 0x2a7   : > { %521 = vrcp.f32 %v258_v9 }
 0x2ad   : > { %v522_v11 = vpop.eup %521 }
 0x2ae   : > { %v377_v10 = vpop.xlane.xlu1 %376 }
 0x2af   : > { %523 = vrcp.f32 %v377_v10 }
 0x2b0   : > { %525 = vrcp.f32 %v319_v16 }
 0x2b1   : > { %527 = vrcp.f32 %v195_v24 }
 0x2b5   : > { %v524_v14 = vpop.eup %523 }
 0x2b6   : > { %v526_v20 = vpop.eup %525 }
 0x2b7   : > { %v280_v12 = vpop.f32.mrf.mxu3  ;;  %v528_v26 = vpop.eup %527 }
 0x2b8   : > { %v285_v13 = vmul.f32 %v522_v11, %v280_v12  ;;  %v218_v27 = vmul.f32 %v528_v26, %v597_v36 }
 0x2ba   : > { %403 = vrot.lane.b32.xlu1 %v285_v13, %s538_s16 }
 0x2bd   : > { %v396_v15 = vpop.f32.mrf.mxu2 }
 0x2be   : > { %v401_v17 = vmul.f32 %v524_v14, %v396_v15 }
 0x2bf   : > { %v282_v18 = vpop.f32.mrf.mxu3 }
 0x2c0   : > { %411 = vrot.lane.b32.xlu2 %v401_v17, %s537_s15 }
 0x2c5   : > { %v398_v19 = vpop.f32.mrf.mxu2 }
 0x2c7   : > { %v338_v21 = vpop.f32.mrf.mxu3 }
 0x2c8   : > { %v343_v22 = vmul.f32 %v526_v20, %v338_v21 }
 0x2ca   : > { %407 = vrot.lane.b32.xlu1 %v343_v22, %s539_s20 }
 0x2cf   : > { %v340_v23 = vpop.f32.mrf.mxu3 }
 0x31a   : > { %v412_v30 = vpop.permute.xlu2 %411 }
 0x32c   : > { %v404_v25 = vpop.permute.xlu1 %403 }
 0x32d   : > { %v414_v28 = vsel %vm161_vm0, %v218_v27, %v404_v25 }
 0x33c   : > { %v408_v29 = vpop.permute.xlu1 %407 }
 0x33d   : > { %v416_v31 = vsel %vm415_vm3, %v414_v28, %v408_v29 }
 0x33e   : > { %v418_v32 = vsel %vm417_vm4, %v416_v31, %v412_v30 }
 0x33f   : > { %v419_v33 = vpack.c.bf16 %v418_v32, %v418_v32 }
 0x341   : > { %420 = vst [vmem:[%s155_s24] sm:$0xf] %v419_v33 }
 0x342 PF: > { %s12_s9 = sadd.s32 1, %s535_s9  }
 0x343   : > { %p9_p4 = scmp.ge.s32.totalorder %s12_s9, 4  }
 0x345   :  { %11 = sbr.rel (!%p9_p4) target bundleno = 1 (0x1), region = 61 }

// kernel: bert_class_forward.13
= control target key start
LH: loop header
LB: loop body
LE: loop exit
PB: predicated region body
PF: predicated region fallthrough
CT: control target
= control target key end

     0   :  { %s594_s1 = inlined_call_operand.vmem [shape: bf16[128,384], index: 1, kind: input, shape index: {}]   ;;  %s595_s0 = inlined_call_operand.vmem [shape: bf16[16,128], index: 0, kind: input, shape index: {}]   ;;  %s596_s2 = inlined_call_operand.vmem [shape: f32[1,384], index: 2, kind: input, shape index: {}]   ;;  %s597_s3 = inlined_call_operand.vmem [shape: bf16[16,384], index: 3, kind: output, shape index: {}]  }
   0x1   :  { %v377_v0 = vld [vmem:[%s594_s1 + $0xa8] sm:$0xf]  ;;  %v410_v1 = vld [vmem:[%s594_s1 + $0xb0] sm:$0xf0]  ;;  %v409_v2 = vld [vmem:[%s594_s1 + $0xac] sm:$0xf] }
   0x2   :  { %v378_v3 = vor.u32 %v410_v1, %v377_v0  ;;  %v379_v4 = vld [vmem:[%s594_s1 + $0xb4] sm:$0xf0]  ;;  %v385_v5 = vld [vmem:[%s594_s1 + $0xb0] sm:$0xf]  ;;  %v411_v6 = vld [vmem:[%s594_s1 + $0xb8] sm:$0xf0] }
   0x3   :  { %v382_v7 = vor.u32 %v409_v2, %v379_v4  ;;  %v386_v8 = vor.u32 %v411_v6, %v385_v5  ;;  %v365_v9 = vld [vmem:[%s594_s1 + $0x90] sm:$0xf]  ;;  %v407_v10 = vld [vmem:[%s594_s1 + $0x98] sm:$0xf0]  ;;  %v406_v11 = vld [vmem:[%s594_s1 + $0x94] sm:$0xf] }
   0x4   :  { %198 = vmatpush.bf16.msra.mxu0 %v378_v3  ;;  %v366_v12 = vor.u32 %v407_v10, %v365_v9  ;;  %v367_v13 = vld [vmem:[%s594_s1 + $0x9c] sm:$0xf0]  ;;  %v373_v14 = vld [vmem:[%s594_s1 + $0x98] sm:$0xf]  ;;  %v408_v15 = vld [vmem:[%s594_s1 + $0xa0] sm:$0xf0] }
   0x5   :  { %212 = vmatpush.bf16.msra.mxu1 %v382_v7  ;;  %226 = vmatpush.bf16.msra.mxu2 %v386_v8  ;;  %v370_v16 = vor.u32 %v406_v11, %v367_v13  ;;  %v374_v17 = vor.u32 %v408_v15, %v373_v14  ;;  %v353_v18 = vld [vmem:[%s594_s1 + $0x78] sm:$0xf]  ;;  %v404_v19 = vld [vmem:[%s594_s1 + $0x80] sm:$0xf0]  ;;  %v403_v20 = vld [vmem:[%s594_s1 + $0x7c] sm:$0xf] }
   0x6   :  { %v355_v21 = vld [vmem:[%s594_s1 + $0x84] sm:$0xf0]  ;;  %v361_v22 = vld [vmem:[%s594_s1 + $0x80] sm:$0xf]  ;;  %v405_v23 = vld [vmem:[%s594_s1 + $0x88] sm:$0xf0]  ;;  %v354_v24 = vor.u32 %v404_v19, %v353_v18 }
   0x7   :  { %v358_v25 = vor.u32 %v403_v20, %v355_v21  ;;  %v362_v26 = vor.u32 %v405_v23, %v361_v22  ;;  %v341_v27 = vld [vmem:[%s594_s1 + $0x60] sm:$0xf]  ;;  %v401_v28 = vld [vmem:[%s594_s1 + $0x68] sm:$0xf0]  ;;  %v400_v29 = vld [vmem:[%s594_s1 + $0x64] sm:$0xf] }
   0x8   :  { %199 = vmatpush.bf16.msra.mxu0 %v366_v12  ;;  %v343_v30 = vld [vmem:[%s594_s1 + $0x6c] sm:$0xf0]  ;;  %v349_v31 = vld [vmem:[%s594_s1 + $0x68] sm:$0xf]  ;;  %v402_v32 = vld [vmem:[%s594_s1 + $0x70] sm:$0xf0]  ;;  %v342_v33 = vor.u32 %v401_v28, %v341_v27 }
   0x9   :  { %213 = vmatpush.bf16.msra.mxu1 %v370_v16  ;;  %227 = vmatpush.bf16.msra.mxu2 %v374_v17  ;;  %v346_v34 = vor.u32 %v400_v29, %v343_v30  ;;  %v350_v35 = vor.u32 %v402_v32, %v349_v31  ;;  %v329_v36 = vld [vmem:[%s594_s1 + $0x48] sm:$0xf]  ;;  %v398_v37 = vld [vmem:[%s594_s1 + $0x50] sm:$0xf0]  ;;  %v397_v38 = vld [vmem:[%s594_s1 + $0x4c] sm:$0xf] }
   0xa   :  { %v331_v39 = vld [vmem:[%s594_s1 + $0x54] sm:$0xf0]  ;;  %v337_v40 = vld [vmem:[%s594_s1 + $0x50] sm:$0xf]  ;;  %v399_v41 = vld [vmem:[%s594_s1 + $0x58] sm:$0xf0]  ;;  %v330_v42 = vor.u32 %v398_v37, %v329_v36 }
   0xb   :  { %v334_v43 = vor.u32 %v397_v38, %v331_v39  ;;  %v338_v44 = vor.u32 %v399_v41, %v337_v40  ;;  %v317_v45 = vld [vmem:[%s594_s1 + $0x30] sm:$0xf]  ;;  %v395_v46 = vld [vmem:[%s594_s1 + $0x38] sm:$0xf0]  ;;  %v394_v47 = vld [vmem:[%s594_s1 + $0x34] sm:$0xf] }
   0xc   :  { %200 = vmatpush.bf16.msra.mxu0 %v354_v24  ;;  %v319_v48 = vld [vmem:[%s594_s1 + $0x3c] sm:$0xf0]  ;;  %v325_v49 = vld [vmem:[%s594_s1 + $0x38] sm:$0xf]  ;;  %v396_v50 = vld [vmem:[%s594_s1 + $0x40] sm:$0xf0]  ;;  %v318_v51 = vor.u32 %v395_v46, %v317_v45 }
   0xd   :  { %214 = vmatpush.bf16.msra.mxu1 %v358_v25  ;;  %228 = vmatpush.bf16.msra.mxu2 %v362_v26  ;;  %v322_v52 = vor.u32 %v394_v47, %v319_v48  ;;  %v326_v53 = vor.u32 %v396_v50, %v325_v49  ;;  %v305_v54 = vld [vmem:[%s594_s1 + $0x18] sm:$0xf]  ;;  %v392_v55 = vld [vmem:[%s594_s1 + $0x20] sm:$0xf0]  ;;  %v391_v56 = vld [vmem:[%s594_s1 + $0x1c] sm:$0xf] }
   0xe   :  { %v307_v57 = vld [vmem:[%s594_s1 + $0x24] sm:$0xf0]  ;;  %v313_v58 = vld [vmem:[%s594_s1 + $0x20] sm:$0xf]  ;;  %v393_v59 = vld [vmem:[%s594_s1 + $0x28] sm:$0xf0]  ;;  %v306_v60 = vor.u32 %v392_v55, %v305_v54 }
   0xf   :  { %v310_v61 = vor.u32 %v391_v56, %v307_v57  ;;  %v314_v62 = vor.u32 %v393_v59, %v313_v58  ;;  %v293_v63 = vld [vmem:[%s594_s1] sm:$0xf]  ;;  %v389_v0 = vld [vmem:[%s594_s1 + $0x8] sm:$0xf0]  ;;  %v388_v1 = vld [vmem:[%s594_s1 + $0x4] sm:$0xf] }
  0x10   :  { %201 = vmatpush.bf16.msra.mxu0 %v342_v33  ;;  %v295_v2 = vld [vmem:[%s594_s1 + $0xc] sm:$0xf0]  ;;  %v301_v3 = vld [vmem:[%s594_s1 + $0x8] sm:$0xf]  ;;  %v390_v4 = vld [vmem:[%s594_s1 + $0x10] sm:$0xf0]  ;;  %v294_v5 = vor.u32 %v389_v0, %v293_v63 }
  0x11   :  { %215 = vmatpush.bf16.msra.mxu1 %v346_v34  ;;  %229 = vmatpush.bf16.msra.mxu2 %v350_v35  ;;  %v298_v6 = vor.u32 %v388_v1, %v295_v2  ;;  %v302_v7 = vor.u32 %v390_v4, %v301_v3  ;;  %v387_v8 = vld [vmem:[%s595_s0] sm:$0xff] }
  0x12   :  { %v261_v9 = vld [vmem:[%s596_s2] sm:$0x7] }
  0x13   :  { %v263_v10 = vperm.slane %v261_v9, 0  ;;  %v264_v11 = vperm.slane %v261_v9, 1  ;;  %v265_v17 = vperm.slane %v261_v9, 2 }
  0x14   :  { %202 = vmatpush.bf16.msra.mxu0 %v330_v42 }
  0x15   :  { %216 = vmatpush.bf16.msra.mxu1 %v334_v43  ;;  %230 = vmatpush.bf16.msra.mxu2 %v338_v44 }
  0x18   :  { %203 = vmatpush.bf16.msra.mxu0 %v318_v51 }
  0x19   :  { %217 = vmatpush.bf16.msra.mxu1 %v322_v52  ;;  %231 = vmatpush.bf16.msra.mxu2 %v326_v53 }
  0x1c   :  { %204 = vmatpush.bf16.msra.mxu0 %v306_v60 }
  0x1d   :  { %218 = vmatpush.bf16.msra.mxu1 %v310_v61  ;;  %232 = vmatpush.bf16.msra.mxu2 %v314_v62 }
  0x20   :  { %205 = vmatpush.bf16.msra.mxu0 %v294_v5 }
  0x21   :  { %219 = vmatpush.bf16.msra.mxu1 %v298_v6  ;;  %233 = vmatpush.bf16.msra.mxu2 %v302_v7 }
  0x23   :  { %206 = vmatmul.bf16.vlgmr.msra.gmra.mxu0 %v387_v8 }
  0x24   :  { %220 = vmatmul.bf16.vlgmr.msra.gmra.mxu1 %v387_v8  ;;  %234 = vmatmul.bf16.vlgmr.msra.gmra.mxu2 %v387_v8 }
  0xa0   :  { %v207_v12 = vpop.f32.mrf.mxu0 }
  0xa1   :  { %v269_v13 = vadd.f32 %v263_v10, %v207_v12  ;;  %v221_v14 = vpop.f32.mrf.mxu1 }
  0xa2   :  { %v270_v15 = vadd.f32 %v264_v11, %v221_v14 }
  0xa4   :  { %v275_v16 = vpack.c.bf16 %v270_v15, %v269_v13 }
  0xa6   :  { %279 = vst [vmem:[%s597_s3] sm:$0xff] %v275_v16 }
  0xa7   :  { %v235_v18 = vpop.f32.mrf.mxu2 }
  0xa8   :  { %v271_v19 = vadd.f32 %v265_v17, %v235_v18  ;;  %v209_v20 = vpop.f32.mrf.mxu0 }
  0xa9   :  { %v272_v21 = vadd.f32 %v263_v10, %v209_v20  ;;  %v223_v22 = vpop.f32.mrf.mxu1 }
  0xaa   :  { %v276_v23 = vpack.c.bf16 %v271_v19, %v271_v19  ;;  %v273_v24 = vadd.f32 %v264_v11, %v223_v22 }
  0xac   :  { %280 = vst [vmem:[%s597_s3 + $0x8] sm:$0xf] %v276_v23  ;;  %v277_v25 = vpack.c.bf16 %v273_v24, %v272_v21 }
  0xae   :  { %281 = vst [vmem:[%s597_s3 + $0xc] sm:$0xff] %v277_v25 }
  0xaf   :  { %v237_v26 = vpop.f32.mrf.mxu2 }
  0xb0   :  { %v274_v27 = vadd.f32 %v265_v17, %v237_v26 }
  0xb2   :  { %v278_v28 = vpack.c.bf16 %v274_v27, %v274_v27 }
  0xb4   :  { %282 = vst [vmem:[%s597_s3 + $0x14] sm:$0xf] %v278_v28 }

// kernel: bert_class_forward.23
= control target key start
LH: loop header
LB: loop body
LE: loop exit
PB: predicated region body
PF: predicated region fallthrough
CT: control target
= control target key end

     0   :  { %vm43_vm0 = vcmask 1041409   ;;  %vm46_vm1 = vcmask 1041408   ;;  %vm55_vm2 = vcmask 1024   ;;  %s99_s0 = inlined_call_operand.vmem [shape: bf16[2,8,128], index: 0, kind: input, shape index: {}]   ;;  %s100_s1 = inlined_call_operand.vmem [shape: f32[1,128], index: 1, kind: input, shape index: {}]   ;;  %s101_s2 = inlined_call_operand.<no memory space> [shape: f32[1,1], index: 2, kind: input, shape index: {}]   ;;  %s102_s3 = inlined_call_operand.vmem [shape: f32[2,1], index: 3, kind: output, shape index: {}]  }
   0x1   :  { %v62_v0 = vld [vmem:[%s99_s0] sm:$0xff]   ;;  %v8_v1 = vstv %s101_s2 }
   0x2   :  { %v63_v2 = vunpack.c.l.bf16 %v62_v0  ;;  %v64_v3 = vunpack.c.h.bf16 %v62_v0  ;;  %9 = vst [vmem:[#allocation2] sm:$0x1] %v8_v1  ;;  %v65_v16 = vld [vmem:[%s100_s1] ss:$0 sm:$0xff] }
   0x4   :  { %v20_v4 = vrot.slane %v63_v2, 4  ;;  %v26_v5 = vrot.slane %v64_v3, 4 }
   0x6   :  { %v21_v6 = vadd.f32 %v63_v2, %v20_v4  ;;  %v27_v7 = vadd.f32 %v64_v3, %v26_v5 }
   0x8   :  { %v22_v8 = vrot.slane %v21_v6, 2  ;;  %v28_v9 = vrot.slane %v27_v7, 2 }
   0x9   :  { %v66_v24 = vld [vmem:[#allocation2] ss:$0 sm:$0xff] }
   0xa   :  { %v23_v10 = vadd.f32 %v22_v8, %v21_v6  ;;  %v29_v11 = vadd.f32 %v28_v9, %v27_v7 }
   0xc   :  { %v24_v12 = vrot.slane %v23_v10, 1  ;;  %v30_v13 = vrot.slane %v29_v11, 1 }
   0xe   :  { %v25_v14 = vadd.f32 %v24_v12, %v23_v10  ;;  %v31_v15 = vadd.f32 %v30_v13, %v29_v11 }
  0x10   :  { %v32_v17 = vmul.f32 0.125, %v25_v14  ;;  %v33_v18 = vmul.f32 0.125, %v31_v15 }
  0x12   :  { %v38_v19 = vmul.f32 %v65_v16, %v32_v17  ;;  %v39_v20 = vmul.f32 %v65_v16, %v33_v18 }
  0x14   :  { %v42_v21 = vrot.slane %v39_v20, 7 }
  0x16   :  { %v44_v22 = vsel %vm43_vm0, %v42_v21, %v38_v19 }
  0x17   :  { %v47_v23 = vsel %vm46_vm1, %v44_v22, 0.0 }
  0x18   :  { %48 = vadd.xlane.f32.xlu0 %v47_v23 }
  0x8b   :  { %v49_v25 = vpop.xlane.xlu0 %48 }
  0x8c   :  { %v54_v26 = vadd.f32 %v66_v24, %v49_v25 }
  0x8e   :  { %56 = vst.msk [vmem:[%s102_s3] sm:$0x3] %vm55_vm2, %v54_v26 }

// kernel: bert_class_forward.16
= control target key start
LH: loop header
LB: loop body
LE: loop exit
PB: predicated region body
PF: predicated region fallthrough
CT: control target
= control target key end

     0   :  { %8 = vsyncpa [#allocation4], 0  ;;  %s646_s15 = smov [#allocation3]   ;;  %s647_s17 = smov 256   ;;  %s704_s0 = inlined_call_operand.vmem [shape: bf16[16,128], index: 0, kind: input, shape index: {}]   ;;  %s705_s1 = inlined_call_operand.hbm [shape: bf16[128,512], index: 1, kind: input, shape index: {}]   ;;  %s706_s2 = inlined_call_operand.vmem [shape: f32[1,512], index: 2, kind: input, shape index: {}]   ;;  %s707_s3 = inlined_call_operand.vmem [shape: bf16[16,512], index: 3, kind: output, shape index: {}]  }
   0x1   :  { %s15_s14 = sshll.u32 %s705_s1, 4  ;;  %s17_s16 = sshll.u32 %s646_s15, 4  ;;  %s16_s14 = int_to_ptr.hbm [resolvable:$true] %s15_s14  ;;  %s18_s16 = int_to_ptr.vmem [resolvable:$true] %s17_s16 }
   0x2   :  { %s648_s18 = smov 16  }
   0x3   :  { %23 = dma.hbm_to_vmem [thread:$0]  %s16_s14, 4096, %s18_s16, [#allocation4], %s647_s17, %s647_s17, %s648_s18  }
   0x4   :  { %644 = dma.done.wait [#allocation4], 4096  }
   0x5   :  { %645 = vsyncadd [#allocation4], 4294963200  ;;  %v554_v0 = vld [vmem:[#allocation3 + $0xe0] sm:$0xf]  ;;  %v599_v1 = vld [vmem:[#allocation3 + $0xec] sm:$0xf0] }
   0x6   :  { %v597_v2 = vld [vmem:[#allocation3 + $0xe4] sm:$0xf]  ;;  %v555_v3 = vor.u32 %v599_v1, %v554_v0  ;;  %v556_v4 = vld [vmem:[#allocation3 + $0xf0] sm:$0xf0]  ;;  %v562_v5 = vld [vmem:[#allocation3 + $0xe8] sm:$0xf] }
   0x7   :  { %v600_v6 = vld [vmem:[#allocation3 + $0xf4] sm:$0xf0]  ;;  %v559_v7 = vor.u32 %v597_v2, %v556_v4  ;;  %v598_v9 = vld [vmem:[#allocation3 + $0xec] sm:$0xf]  ;;  %v564_v10 = vld [vmem:[#allocation3 + $0xf8] sm:$0xf0] }
   0x8   :  { %v563_v8 = vor.u32 %v600_v6, %v562_v5  ;;  %v538_v11 = vld [vmem:[#allocation3 + $0xc0] sm:$0xf]  ;;  %250 = vmatpush.bf16.msra.mxu0 %v555_v3  ;;  %v567_v12 = vor.u32 %v598_v9, %v564_v10  ;;  %v595_v13 = vld [vmem:[#allocation3 + $0xcc] sm:$0xf0]  ;;  %v593_v14 = vld [vmem:[#allocation3 + $0xc4] sm:$0xf] }
   0x9   :  { %v540_v15 = vld [vmem:[#allocation3 + $0xd0] sm:$0xf0]  ;;  %264 = vmatpush.bf16.msra.mxu1 %v559_v7  ;;  %v539_v16 = vor.u32 %v595_v13, %v538_v11  ;;  %v546_v18 = vld [vmem:[#allocation3 + $0xc8] sm:$0xf]  ;;  %v596_v19 = vld [vmem:[#allocation3 + $0xd4] sm:$0xf0] }
   0xa   :  { %278 = vmatpush.bf16.msra.mxu2 %v563_v8  ;;  %v543_v17 = vor.u32 %v593_v14, %v540_v15  ;;  %v594_v20 = vld [vmem:[#allocation3 + $0xcc] sm:$0xf]  ;;  %292 = vmatpush.bf16.msra.mxu3 %v567_v12  ;;  %v547_v21 = vor.u32 %v596_v19, %v546_v18  ;;  %v548_v22 = vld [vmem:[#allocation3 + $0xd8] sm:$0xf0]  ;;  %v522_v23 = vld [vmem:[#allocation3 + $0xa0] sm:$0xf] }
   0xb   :  { %v591_v24 = vld [vmem:[#allocation3 + $0xac] sm:$0xf0]  ;;  %v551_v25 = vor.u32 %v594_v20, %v548_v22  ;;  %v589_v26 = vld [vmem:[#allocation3 + $0xa4] sm:$0xf]  ;;  %v524_v27 = vld [vmem:[#allocation3 + $0xb0] sm:$0xf0] }
   0xc   :  { %v530_v28 = vld [vmem:[#allocation3 + $0xa8] sm:$0xf]  ;;  %251 = vmatpush.bf16.msra.mxu0 %v539_v16  ;;  %v523_v29 = vor.u32 %v591_v24, %v522_v23  ;;  %v592_v30 = vld [vmem:[#allocation3 + $0xb4] sm:$0xf0]  ;;  %v590_v31 = vld [vmem:[#allocation3 + $0xac] sm:$0xf]  ;;  %v527_v33 = vor.u32 %v589_v26, %v524_v27 }
   0xd   :  { %v532_v32 = vld [vmem:[#allocation3 + $0xb8] sm:$0xf0]  ;;  %265 = vmatpush.bf16.msra.mxu1 %v543_v17  ;;  %v531_v34 = vor.u32 %v592_v30, %v530_v28  ;;  %v506_v35 = vld [vmem:[#allocation3 + $0x80] sm:$0xf]  ;;  %v587_v36 = vld [vmem:[#allocation3 + $0x8c] sm:$0xf0] }
   0xe   :  { %279 = vmatpush.bf16.msra.mxu2 %v547_v21  ;;  %v585_v37 = vld [vmem:[#allocation3 + $0x84] sm:$0xf]  ;;  %293 = vmatpush.bf16.msra.mxu3 %v551_v25  ;;  %v535_v38 = vor.u32 %v590_v31, %v532_v32  ;;  %v508_v39 = vld [vmem:[#allocation3 + $0x90] sm:$0xf0]  ;;  %v514_v40 = vld [vmem:[#allocation3 + $0x88] sm:$0xf]  ;;  %v507_v44 = vor.u32 %v587_v36, %v506_v35 }
   0xf   :  { %v588_v41 = vld [vmem:[#allocation3 + $0x94] sm:$0xf0]  ;;  %v586_v42 = vld [vmem:[#allocation3 + $0x8c] sm:$0xf]  ;;  %v516_v43 = vld [vmem:[#allocation3 + $0x98] sm:$0xf0]  ;;  %v511_v45 = vor.u32 %v585_v37, %v508_v39 }
  0x10   :  { %252 = vmatpush.bf16.msra.mxu0 %v523_v29  ;;  %v515_v46 = vor.u32 %v588_v41, %v514_v40  ;;  %v490_v47 = vld [vmem:[#allocation3 + $0x60] sm:$0xf]  ;;  %v583_v48 = vld [vmem:[#allocation3 + $0x6c] sm:$0xf0]  ;;  %v581_v49 = vld [vmem:[#allocation3 + $0x64] sm:$0xf]  ;;  %v519_v50 = vor.u32 %v586_v42, %v516_v43 }
  0x11   :  { %266 = vmatpush.bf16.msra.mxu1 %v527_v33  ;;  %v492_v51 = vld [vmem:[#allocation3 + $0x70] sm:$0xf0]  ;;  %v498_v52 = vld [vmem:[#allocation3 + $0x68] sm:$0xf]  ;;  %v584_v53 = vld [vmem:[#allocation3 + $0x74] sm:$0xf0]  ;;  %v491_v56 = vor.u32 %v583_v48, %v490_v47 }
  0x12   :  { %280 = vmatpush.bf16.msra.mxu2 %v531_v34  ;;  %294 = vmatpush.bf16.msra.mxu3 %v535_v38  ;;  %v582_v54 = vld [vmem:[#allocation3 + $0x6c] sm:$0xf]  ;;  %v500_v55 = vld [vmem:[#allocation3 + $0x78] sm:$0xf0]  ;;  %v495_v57 = vor.u32 %v581_v49, %v492_v51  ;;  %v499_v58 = vor.u32 %v584_v53, %v498_v52  ;;  %v474_v59 = vld [vmem:[#allocation3 + $0x40] sm:$0xf] }
  0x13   :  { %v579_v60 = vld [vmem:[#allocation3 + $0x4c] sm:$0xf0]  ;;  %v577_v61 = vld [vmem:[#allocation3 + $0x44] sm:$0xf]  ;;  %v503_v62 = vor.u32 %v582_v54, %v500_v55  ;;  %v476_v63 = vld [vmem:[#allocation3 + $0x50] sm:$0xf0] }
  0x14   :  { %253 = vmatpush.bf16.msra.mxu0 %v507_v44  ;;  %v482_v0 = vld [vmem:[#allocation3 + $0x48] sm:$0xf]  ;;  %v580_v1 = vld [vmem:[#allocation3 + $0x54] sm:$0xf0]  ;;  %v578_v2 = vld [vmem:[#allocation3 + $0x4c] sm:$0xf]  ;;  %v475_v4 = vor.u32 %v579_v60, %v474_v59  ;;  %v479_v5 = vor.u32 %v577_v61, %v476_v63 }
  0x15   :  { %267 = vmatpush.bf16.msra.mxu1 %v511_v45  ;;  %v484_v3 = vld [vmem:[#allocation3 + $0x58] sm:$0xf0]  ;;  %v483_v6 = vor.u32 %v580_v1, %v482_v0  ;;  %v458_v7 = vld [vmem:[#allocation3 + $0x20] sm:$0xf]  ;;  %v575_v8 = vld [vmem:[#allocation3 + $0x2c] sm:$0xf0] }
  0x16   :  { %281 = vmatpush.bf16.msra.mxu2 %v515_v46  ;;  %295 = vmatpush.bf16.msra.mxu3 %v519_v50  ;;  %v573_v9 = vld [vmem:[#allocation3 + $0x24] sm:$0xf]  ;;  %v487_v10 = vor.u32 %v578_v2, %v484_v3  ;;  %v460_v11 = vld [vmem:[#allocation3 + $0x30] sm:$0xf0]  ;;  %v466_v12 = vld [vmem:[#allocation3 + $0x28] sm:$0xf]  ;;  %v459_v16 = vor.u32 %v575_v8, %v458_v7 }
  0x17   :  { %v576_v13 = vld [vmem:[#allocation3 + $0x34] sm:$0xf0]  ;;  %v574_v14 = vld [vmem:[#allocation3 + $0x2c] sm:$0xf]  ;;  %v468_v15 = vld [vmem:[#allocation3 + $0x38] sm:$0xf0]  ;;  %v463_v17 = vor.u32 %v573_v9, %v460_v11 }
  0x18   :  { %254 = vmatpush.bf16.msra.mxu0 %v491_v56  ;;  %v467_v18 = vor.u32 %v576_v13, %v466_v12  ;;  %v442_v19 = vld [vmem:[#allocation3] sm:$0xf]  ;;  %v571_v20 = vld [vmem:[#allocation3 + $0xc] sm:$0xf0]  ;;  %v569_v21 = vld [vmem:[#allocation3 + $0x4] sm:$0xf]  ;;  %v471_v22 = vor.u32 %v574_v14, %v468_v15 }
  0x19   :  { %268 = vmatpush.bf16.msra.mxu1 %v495_v57  ;;  %v444_v23 = vld [vmem:[#allocation3 + $0x10] sm:$0xf0]  ;;  %v450_v24 = vld [vmem:[#allocation3 + $0x8] sm:$0xf]  ;;  %v572_v25 = vld [vmem:[#allocation3 + $0x14] sm:$0xf0]  ;;  %v443_v28 = vor.u32 %v571_v20, %v442_v19 }
  0x1a   :  { %282 = vmatpush.bf16.msra.mxu2 %v499_v58  ;;  %296 = vmatpush.bf16.msra.mxu3 %v503_v62  ;;  %v570_v26 = vld [vmem:[#allocation3 + $0xc] sm:$0xf]  ;;  %v452_v27 = vld [vmem:[#allocation3 + $0x18] sm:$0xf0]  ;;  %v447_v29 = vor.u32 %v569_v21, %v444_v23  ;;  %v451_v30 = vor.u32 %v572_v25, %v450_v24  ;;  %v568_v32 = vld [vmem:[%s704_s0] sm:$0xff] }
  0x1b   :  { %v455_v31 = vor.u32 %v570_v26, %v452_v27  ;;  %v333_v33 = vld [vmem:[%s706_s2] sm:$0xf] }
  0x1c   :  { %255 = vmatpush.bf16.msra.mxu0 %v475_v4  ;;  %v335_v34 = vperm.slane %v333_v33, 0  ;;  %v336_v35 = vperm.slane %v333_v33, 1  ;;  %v337_v42 = vperm.slane %v333_v33, 2  ;;  %v338_v44 = vperm.slane %v333_v33, 3 }
  0x1d   :  { %269 = vmatpush.bf16.msra.mxu1 %v479_v5 }
  0x1e   :  { %283 = vmatpush.bf16.msra.mxu2 %v483_v6  ;;  %297 = vmatpush.bf16.msra.mxu3 %v487_v10 }
  0x20   :  { %256 = vmatpush.bf16.msra.mxu0 %v459_v16 }
  0x21   :  { %270 = vmatpush.bf16.msra.mxu1 %v463_v17 }
  0x22   :  { %284 = vmatpush.bf16.msra.mxu2 %v467_v18  ;;  %298 = vmatpush.bf16.msra.mxu3 %v471_v22 }
  0x24   :  { %257 = vmatpush.bf16.msra.mxu0 %v443_v28 }
  0x25   :  { %271 = vmatpush.bf16.msra.mxu1 %v447_v29 }
  0x26   :  { %285 = vmatpush.bf16.msra.mxu2 %v451_v30  ;;  %299 = vmatpush.bf16.msra.mxu3 %v455_v31 }
  0x27   :  { %258 = vmatmul.bf16.vlgmr.msra.gmra.mxu0 %v568_v32 }
  0x28   :  { %272 = vmatmul.bf16.vlgmr.msra.gmra.mxu1 %v568_v32 }
  0x29   :  { %286 = vmatmul.bf16.vlgmr.msra.gmra.mxu2 %v568_v32  ;;  %300 = vmatmul.bf16.vlgmr.msra.gmra.mxu3 %v568_v32 }
  0xa4   :  { %v259_v36 = vpop.f32.mrf.mxu0 }
  0xa5   :  { %v343_v37 = vadd.f32 %v335_v34, %v259_v36  ;;  %v273_v38 = vpop.f32.mrf.mxu1 }
  0xa6   :  { %v344_v39 = vadd.f32 %v336_v35, %v273_v38 }
  0xa7   :  { %v359_v40 = vmul.f32 0.044715, %v343_v37  ;;  %v351_v14 = vmul.f32 0.5, %v343_v37 }
  0xa8   :  { %v360_v41 = vmul.f32 0.044715, %v344_v39  ;;  %v352_v19 = vmul.f32 0.5, %v344_v39 }
  0xa9   :  { %v367_v43 = vmul.f32 %v359_v40, %v343_v37 }
  0xaa   :  { %v368_v45 = vmul.f32 %v360_v41, %v344_v39 }
  0xab   :  { %v375_v46 = vmul.f32 %v367_v43, %v343_v37 }
  0xac   :  { %v287_v47 = vpop.f32.mrf.mxu2  ;;  %v376_v48 = vmul.f32 %v368_v45, %v344_v39  ;;  %v301_v50 = vpop.f32.mrf.mxu3 }
  0xad   :  { %v345_v49 = vadd.f32 %v337_v42, %v287_v47  ;;  %v261_v51 = vpop.f32.mrf.mxu0  ;;  %v383_v52 = vadd.f32 %v375_v46, %v343_v37  ;;  %v346_v53 = vadd.f32 %v338_v44, %v301_v50  ;;  %v275_v55 = vpop.f32.mrf.mxu1 }
  0xae   :  { %v678_v54 = vadd.f32 %v335_v34, %v261_v51  ;;  %v384_v56 = vadd.f32 %v376_v48, %v344_v39  ;;  %v680_v58 = vadd.f32 %v336_v35, %v275_v55 }
  0xaf   :  { %v361_v57 = vmul.f32 0.044715, %v345_v49  ;;  %v391_v59 = vmul.f32 0.7978846, %v383_v52  ;;  %v362_v60 = vmul.f32 0.044715, %v346_v53 }
  0xb0   :  { %v392_v61 = vmul.f32 0.7978846, %v384_v56  ;;  %v363_v63 = vmul.f32 0.044715, %v678_v54  ;;  %v364_v1 = vmul.f32 0.044715, %v680_v58 }
  0xb1   :  { %v369_v62 = vmul.f32 %v361_v57, %v345_v49  ;;  %604 = vtanh.f32 %v391_v59  ;;  %v370_v0 = vmul.f32 %v362_v60, %v346_v53  ;;  %v353_v40 = vmul.f32 0.5, %v345_v49 }
  0xb2   :  { %606 = vtanh.f32 %v392_v61  ;;  %v371_v3 = vmul.f32 %v363_v63, %v678_v54  ;;  %v372_v5 = vmul.f32 %v364_v1, %v680_v58  ;;  %v355_v48 = vmul.f32 0.5, %v678_v54 }
  0xb3   :  { %v377_v2 = vmul.f32 %v369_v62, %v345_v49  ;;  %v378_v4 = vmul.f32 %v370_v0, %v346_v53  ;;  %v356_v52 = vmul.f32 0.5, %v680_v58 }
  0xb4   :  { %v289_v6 = vpop.f32.mrf.mxu2  ;;  %v379_v8 = vmul.f32 %v371_v3, %v678_v54  ;;  %v303_v10 = vpop.f32.mrf.mxu3  ;;  %v380_v12 = vmul.f32 %v372_v5, %v680_v58 }
  0xb5   :  { %v385_v7 = vadd.f32 %v377_v2, %v345_v49  ;;  %v349_v9 = vadd.f32 %v337_v42, %v289_v6  ;;  %v386_v11 = vadd.f32 %v378_v4, %v346_v53  ;;  %v350_v13 = vadd.f32 %v338_v44, %v303_v10 }
  0xb6   :  { %v387_v16 = vadd.f32 %v379_v8, %v678_v54  ;;  %v388_v21 = vadd.f32 %v380_v12, %v680_v58  ;;  %v354_v44 = vmul.f32 0.5, %v346_v53 }
  0xb7   :  { %v393_v15 = vmul.f32 0.7978846, %v385_v7  ;;  %v365_v17 = vmul.f32 0.044715, %v349_v9  ;;  %v605_v18 = vpop.eup %604  ;;  %v394_v20 = vmul.f32 0.7978846, %v386_v11 }
  0xb8   :  { %v366_v22 = vmul.f32 0.044715, %v350_v13  ;;  %v607_v23 = vpop.eup %606  ;;  %v407_v24 = vadd.f32 1.0, %v605_v18  ;;  %v395_v25 = vmul.f32 0.7978846, %v387_v16  ;;  %v357_v61 = vmul.f32 0.5, %v349_v9 }
  0xb9   :  { %608 = vtanh.f32 %v393_v15  ;;  %v373_v26 = vmul.f32 %v365_v17, %v349_v9  ;;  %v408_v27 = vadd.f32 1.0, %v607_v23  ;;  %v396_v28 = vmul.f32 0.7978846, %v388_v21 }
  0xba   :  { %610 = vtanh.f32 %v394_v20  ;;  %v374_v29 = vmul.f32 %v366_v22, %v350_v13  ;;  %v415_v30 = vmul.f32 %v407_v24, %v351_v14  ;;  %v358_v54 = vmul.f32 0.5, %v350_v13 }
  0xbb   :  { %612 = vtanh.f32 %v395_v25  ;;  %v381_v31 = vmul.f32 %v373_v26, %v349_v9  ;;  %v416_v32 = vmul.f32 %v408_v27, %v352_v19 }
  0xbc   :  { %614 = vtanh.f32 %v396_v28  ;;  %v382_v33 = vmul.f32 %v374_v29, %v350_v13 }
  0xbd   :  { %v389_v34 = vadd.f32 %v381_v31, %v349_v9  ;;  %v423_v35 = vpack.c.bf16 %v416_v32, %v415_v30 }
  0xbe   :  { %v390_v36 = vadd.f32 %v382_v33, %v350_v13 }
  0xbf   :  { %v609_v37 = vpop.eup %608  ;;  %v397_v38 = vmul.f32 0.7978846, %v389_v34  ;;  %427 = vst [vmem:[%s707_s3] sm:$0xff] %v423_v35 }
  0xc0   :  { %v611_v39 = vpop.eup %610  ;;  %v409_v41 = vadd.f32 1.0, %v609_v37  ;;  %v398_v42 = vmul.f32 0.7978846, %v390_v36 }
  0xc1   :  { %v613_v43 = vpop.eup %612  ;;  %v410_v45 = vadd.f32 1.0, %v611_v39  ;;  %616 = vtanh.f32 %v397_v38 }
  0xc2   :  { %v615_v46 = vpop.eup %614  ;;  %v417_v47 = vmul.f32 %v409_v41, %v353_v40  ;;  %v411_v50 = vadd.f32 1.0, %v613_v43  ;;  %618 = vtanh.f32 %v398_v42 }
  0xc3   :  { %v418_v51 = vmul.f32 %v410_v45, %v354_v44  ;;  %v412_v55 = vadd.f32 1.0, %v615_v46 }
  0xc4   :  { %v419_v56 = vmul.f32 %v411_v50, %v355_v48 }
  0xc5   :  { %v424_v57 = vpack.c.bf16 %v418_v51, %v417_v47  ;;  %v420_v59 = vmul.f32 %v412_v55, %v356_v52 }
  0xc7   :  { %v617_v49 = vpop.eup %616  ;;  %428 = vst [vmem:[%s707_s3 + $0x8] sm:$0xff] %v424_v57  ;;  %v425_v53 = vpack.c.bf16 %v420_v59, %v419_v56 }
  0xc8   :  { %v619_v60 = vpop.eup %618  ;;  %v413_v62 = vadd.f32 1.0, %v617_v49 }
  0xc9   :  { %429 = vst [vmem:[%s707_s3 + $0x10] sm:$0xff] %v425_v53  ;;  %v414_v63 = vadd.f32 1.0, %v619_v60 }
  0xca   :  { %v421_v58 = vmul.f32 %v413_v62, %v357_v61 }
  0xcb   :  { %v422_v0 = vmul.f32 %v414_v63, %v358_v54 }
  0xcd   :  { %v426_v1 = vpack.c.bf16 %v422_v0, %v421_v58 }
  0xcf   :  { %430 = vst [vmem:[%s707_s3 + $0x18] sm:$0xff] %v426_v1 }
  0xd0   :  { %435 = vsyncpa [#allocation4], 1 }

// kernel: bert_class_forward.18
= control target key start
LH: loop header
LB: loop body
LE: loop exit
PB: predicated region body
PF: predicated region fallthrough
CT: control target
= control target key end

     0   :  { %8 = vsyncpa [#allocation4], 0  ;;  %s458_s15 = smov [#allocation3]   ;;  %s459_s17 = smov 192   ;;  %s502_s0 = inlined_call_operand.vmem [shape: bf16[16,128], index: 0, kind: input, shape index: {}]   ;;  %s503_s1 = inlined_call_operand.hbm [shape: bf16[128,384], index: 1, kind: input, shape index: {}]   ;;  %s504_s2 = inlined_call_operand.vmem [shape: f32[1,384], index: 2, kind: input, shape index: {}]   ;;  %s505_s3 = inlined_call_operand.vmem [shape: bf16[16,384], index: 3, kind: output, shape index: {}]  }
   0x1   :  { %s15_s14 = sshll.u32 %s503_s1, 4  ;;  %s17_s16 = sshll.u32 %s458_s15, 4  ;;  %s16_s14 = int_to_ptr.hbm [resolvable:$true] %s15_s14  ;;  %s18_s16 = int_to_ptr.vmem [resolvable:$true] %s17_s16 }
   0x2   :  { %s460_s18 = smov 12  }
   0x3   :  { %23 = dma.hbm_to_vmem [thread:$0]  %s16_s14, 3072, %s18_s16, [#allocation4], %s459_s17, %s459_s17, %s460_s18  }
   0x4   :  { %456 = dma.done.wait [#allocation4], 3072  }
   0x5   :  { %457 = vsyncadd [#allocation4], 4294964224  ;;  %v394_v0 = vld [vmem:[#allocation3 + $0xa8] sm:$0xf]  ;;  %v427_v1 = vld [vmem:[#allocation3 + $0xb0] sm:$0xf0] }
   0x6   :  { %v426_v2 = vld [vmem:[#allocation3 + $0xac] sm:$0xf]  ;;  %v395_v3 = vor.u32 %v427_v1, %v394_v0  ;;  %v396_v4 = vld [vmem:[#allocation3 + $0xb4] sm:$0xf0]  ;;  %v402_v5 = vld [vmem:[#allocation3 + $0xb0] sm:$0xf] }
   0x7   :  { %v428_v6 = vld [vmem:[#allocation3 + $0xb8] sm:$0xf0]  ;;  %v399_v7 = vor.u32 %v426_v2, %v396_v4  ;;  %v382_v9 = vld [vmem:[#allocation3 + $0x90] sm:$0xf]  ;;  %v423_v11 = vld [vmem:[#allocation3 + $0x94] sm:$0xf] }
   0x8   :  { %v403_v8 = vor.u32 %v428_v6, %v402_v5  ;;  %v424_v10 = vld [vmem:[#allocation3 + $0x98] sm:$0xf0]  ;;  %214 = vmatpush.bf16.msra.mxu0 %v395_v3  ;;  %v384_v13 = vld [vmem:[#allocation3 + $0x9c] sm:$0xf0]  ;;  %v390_v14 = vld [vmem:[#allocation3 + $0x98] sm:$0xf] }
   0x9   :  { %v383_v12 = vor.u32 %v424_v10, %v382_v9  ;;  %v425_v15 = vld [vmem:[#allocation3 + $0xa0] sm:$0xf0]  ;;  %228 = vmatpush.bf16.msra.mxu1 %v399_v7  ;;  %v387_v16 = vor.u32 %v423_v11, %v384_v13  ;;  %v370_v18 = vld [vmem:[#allocation3 + $0x78] sm:$0xf]  ;;  %v420_v20 = vld [vmem:[#allocation3 + $0x7c] sm:$0xf] }
   0xa   :  { %242 = vmatpush.bf16.msra.mxu2 %v403_v8  ;;  %v391_v17 = vor.u32 %v425_v15, %v390_v14  ;;  %v421_v19 = vld [vmem:[#allocation3 + $0x80] sm:$0xf0]  ;;  %v372_v21 = vld [vmem:[#allocation3 + $0x84] sm:$0xf0]  ;;  %v378_v22 = vld [vmem:[#allocation3 + $0x80] sm:$0xf] }
   0xb   :  { %v422_v23 = vld [vmem:[#allocation3 + $0x88] sm:$0xf0]  ;;  %v371_v24 = vor.u32 %v421_v19, %v370_v18  ;;  %v375_v25 = vor.u32 %v420_v20, %v372_v21  ;;  %v358_v27 = vld [vmem:[#allocation3 + $0x60] sm:$0xf]  ;;  %v417_v29 = vld [vmem:[#allocation3 + $0x64] sm:$0xf] }
   0xc   :  { %215 = vmatpush.bf16.msra.mxu0 %v383_v12  ;;  %v379_v26 = vor.u32 %v422_v23, %v378_v22  ;;  %v418_v28 = vld [vmem:[#allocation3 + $0x68] sm:$0xf0]  ;;  %v360_v30 = vld [vmem:[#allocation3 + $0x6c] sm:$0xf0]  ;;  %v366_v31 = vld [vmem:[#allocation3 + $0x68] sm:$0xf] }
   0xd   :  { %229 = vmatpush.bf16.msra.mxu1 %v387_v16  ;;  %v419_v32 = vld [vmem:[#allocation3 + $0x70] sm:$0xf0]  ;;  %v359_v33 = vor.u32 %v418_v28, %v358_v27  ;;  %v363_v34 = vor.u32 %v417_v29, %v360_v30  ;;  %v346_v36 = vld [vmem:[#allocation3 + $0x48] sm:$0xf]  ;;  %v414_v38 = vld [vmem:[#allocation3 + $0x4c] sm:$0xf] }
   0xe   :  { %243 = vmatpush.bf16.msra.mxu2 %v391_v17  ;;  %v367_v35 = vor.u32 %v419_v32, %v366_v31  ;;  %v415_v37 = vld [vmem:[#allocation3 + $0x50] sm:$0xf0]  ;;  %v348_v39 = vld [vmem:[#allocation3 + $0x54] sm:$0xf0]  ;;  %v354_v40 = vld [vmem:[#allocation3 + $0x50] sm:$0xf] }
   0xf   :  { %v416_v41 = vld [vmem:[#allocation3 + $0x58] sm:$0xf0]  ;;  %v347_v42 = vor.u32 %v415_v37, %v346_v36  ;;  %v351_v43 = vor.u32 %v414_v38, %v348_v39  ;;  %v334_v45 = vld [vmem:[#allocation3 + $0x30] sm:$0xf]  ;;  %v411_v47 = vld [vmem:[#allocation3 + $0x34] sm:$0xf] }
  0x10   :  { %216 = vmatpush.bf16.msra.mxu0 %v371_v24  ;;  %v355_v44 = vor.u32 %v416_v41, %v354_v40  ;;  %v412_v46 = vld [vmem:[#allocation3 + $0x38] sm:$0xf0]  ;;  %v336_v48 = vld [vmem:[#allocation3 + $0x3c] sm:$0xf0]  ;;  %v342_v49 = vld [vmem:[#allocation3 + $0x38] sm:$0xf] }
  0x11   :  { %230 = vmatpush.bf16.msra.mxu1 %v375_v25  ;;  %v413_v50 = vld [vmem:[#allocation3 + $0x40] sm:$0xf0]  ;;  %v335_v51 = vor.u32 %v412_v46, %v334_v45  ;;  %v339_v52 = vor.u32 %v411_v47, %v336_v48  ;;  %v322_v54 = vld [vmem:[#allocation3 + $0x18] sm:$0xf]  ;;  %v408_v56 = vld [vmem:[#allocation3 + $0x1c] sm:$0xf] }
  0x12   :  { %244 = vmatpush.bf16.msra.mxu2 %v379_v26  ;;  %v343_v53 = vor.u32 %v413_v50, %v342_v49  ;;  %v409_v55 = vld [vmem:[#allocation3 + $0x20] sm:$0xf0]  ;;  %v324_v57 = vld [vmem:[#allocation3 + $0x24] sm:$0xf0]  ;;  %v330_v58 = vld [vmem:[#allocation3 + $0x20] sm:$0xf] }
  0x13   :  { %v410_v59 = vld [vmem:[#allocation3 + $0x28] sm:$0xf0]  ;;  %v323_v60 = vor.u32 %v409_v55, %v322_v54  ;;  %v327_v61 = vor.u32 %v408_v56, %v324_v57  ;;  %v310_v63 = vld [vmem:[#allocation3] sm:$0xf]  ;;  %v405_v1 = vld [vmem:[#allocation3 + $0x4] sm:$0xf] }
  0x14   :  { %217 = vmatpush.bf16.msra.mxu0 %v359_v33  ;;  %v331_v62 = vor.u32 %v410_v59, %v330_v58  ;;  %v406_v0 = vld [vmem:[#allocation3 + $0x8] sm:$0xf0]  ;;  %v312_v2 = vld [vmem:[#allocation3 + $0xc] sm:$0xf0]  ;;  %v318_v3 = vld [vmem:[#allocation3 + $0x8] sm:$0xf] }
  0x15   :  { %231 = vmatpush.bf16.msra.mxu1 %v363_v34  ;;  %v407_v4 = vld [vmem:[#allocation3 + $0x10] sm:$0xf0]  ;;  %v311_v5 = vor.u32 %v406_v0, %v310_v63  ;;  %v315_v6 = vor.u32 %v405_v1, %v312_v2  ;;  %v404_v8 = vld [vmem:[%s502_s0] sm:$0xff] }
  0x16   :  { %245 = vmatpush.bf16.msra.mxu2 %v367_v35  ;;  %v319_v7 = vor.u32 %v407_v4, %v318_v3  ;;  %v277_v9 = vld [vmem:[%s504_s2] sm:$0x7] }
  0x17   :  { %v279_v10 = vperm.slane %v277_v9, 0  ;;  %v280_v11 = vperm.slane %v277_v9, 1  ;;  %v281_v17 = vperm.slane %v277_v9, 2 }
  0x18   :  { %218 = vmatpush.bf16.msra.mxu0 %v347_v42 }
  0x19   :  { %232 = vmatpush.bf16.msra.mxu1 %v351_v43 }
  0x1a   :  { %246 = vmatpush.bf16.msra.mxu2 %v355_v44 }
  0x1c   :  { %219 = vmatpush.bf16.msra.mxu0 %v335_v51 }
  0x1d   :  { %233 = vmatpush.bf16.msra.mxu1 %v339_v52 }
  0x1e   :  { %247 = vmatpush.bf16.msra.mxu2 %v343_v53 }
  0x20   :  { %220 = vmatpush.bf16.msra.mxu0 %v323_v60 }
  0x21   :  { %234 = vmatpush.bf16.msra.mxu1 %v327_v61 }
  0x22   :  { %248 = vmatpush.bf16.msra.mxu2 %v331_v62 }
  0x24   :  { %221 = vmatpush.bf16.msra.mxu0 %v311_v5 }
  0x25   :  { %235 = vmatpush.bf16.msra.mxu1 %v315_v6 }
  0x26   :  { %249 = vmatpush.bf16.msra.mxu2 %v319_v7 }
  0x27   :  { %222 = vmatmul.bf16.vlgmr.msra.gmra.mxu0 %v404_v8 }
  0x28   :  { %236 = vmatmul.bf16.vlgmr.msra.gmra.mxu1 %v404_v8 }
  0x29   :  { %250 = vmatmul.bf16.vlgmr.msra.gmra.mxu2 %v404_v8 }
  0xa4   :  { %v223_v12 = vpop.f32.mrf.mxu0 }
  0xa5   :  { %v285_v13 = vadd.f32 %v279_v10, %v223_v12  ;;  %v237_v14 = vpop.f32.mrf.mxu1 }
  0xa6   :  { %v286_v15 = vadd.f32 %v280_v11, %v237_v14 }
  0xa8   :  { %v291_v16 = vpack.c.bf16 %v286_v15, %v285_v13 }
  0xaa   :  { %295 = vst [vmem:[%s505_s3] sm:$0xff] %v291_v16 }
  0xac   :  { %v251_v18 = vpop.f32.mrf.mxu2  ;;  %v225_v20 = vpop.f32.mrf.mxu0 }
  0xad   :  { %v287_v19 = vadd.f32 %v281_v17, %v251_v18  ;;  %v288_v21 = vadd.f32 %v279_v10, %v225_v20  ;;  %v239_v22 = vpop.f32.mrf.mxu1 }
  0xae   :  { %v289_v24 = vadd.f32 %v280_v11, %v239_v22 }
  0xaf   :  { %v292_v23 = vpack.c.bf16 %v287_v19, %v287_v19 }
  0xb0   :  { %v293_v25 = vpack.c.bf16 %v289_v24, %v288_v21 }
  0xb1   :  { %296 = vst [vmem:[%s505_s3 + $0x8] sm:$0xf] %v292_v23 }
  0xb2   :  { %297 = vst [vmem:[%s505_s3 + $0xc] sm:$0xff] %v293_v25 }
  0xb4   :  { %v253_v26 = vpop.f32.mrf.mxu2 }
  0xb5   :  { %v290_v27 = vadd.f32 %v281_v17, %v253_v26 }
  0xb7   :  { %v294_v28 = vpack.c.bf16 %v290_v27, %v290_v27 }
  0xb9   :  { %298 = vst [vmem:[%s505_s3 + $0x14] sm:$0xf] %v294_v28 }
  0xba   :  { %303 = vsyncpa [#allocation4], 1 }

// kernel: bert_class_forward.17
= control target key start
LH: loop header
LB: loop body
LE: loop exit
PB: predicated region body
PF: predicated region fallthrough
CT: control target
= control target key end

     0   :  { %11 = vsyncpa [#allocation4], 0  ;;  %s700_s24 = smov [#allocation3]   ;;  %s701_s26 = smov 64   ;;  %s781_s0 = inlined_call_operand.vmem [shape: bf16[16,512], index: 0, kind: input, shape index: {}]   ;;  %s782_s1 = inlined_call_operand.hbm [shape: bf16[512,128], index: 1, kind: input, shape index: {}]   ;;  %s783_s2 = inlined_call_operand.vmem [shape: f32[1,128], index: 2, kind: input, shape index: {}]   ;;  %s784_s3 = inlined_call_operand.vmem [shape: bf16[16,128], index: 3, kind: input, shape index: {}]   ;;  %s785_s4 = inlined_call_operand.vmem [shape: f32[1,128], index: 4, kind: input, shape index: {}]   ;;  %s786_s5 = inlined_call_operand.vmem [shape: f32[1,128], index: 5, kind: input, shape index: {}]   ;;  %s787_s6 = inlined_call_operand.vmem [shape: bf16[16,128], index: 6, kind: output, shape index: {}]  }
   0x1   :  { %s18_s23 = sshll.u32 %s782_s1, 4  ;;  %s20_s25 = sshll.u32 %s700_s24, 4  ;;  %s19_s23 = int_to_ptr.hbm [resolvable:$true] %s18_s23  ;;  %s21_s25 = int_to_ptr.vmem [resolvable:$true] %s20_s25 }
   0x2   :  { %s702_s27 = smov 4  }
   0x3   :  { %26 = dma.hbm_to_vmem [thread:$0]  %s19_s23, 4096, %s21_s25, [#allocation4], %s701_s26, %s701_s26, %s702_s27  }
   0x4   :  { %698 = dma.done.wait [#allocation4], 4096  }
   0x5   :  { %699 = vsyncadd [#allocation4], 4294963200  ;;  %v627_v0 = vld [vmem:[#allocation3 + $0x38] sm:$0xff]  ;;  %v626_v4 = vld [vmem:[#allocation3 + $0x30] sm:$0xff] }
   0x6   :  { %v635_v1 = vld [vmem:[#allocation3 + $0x78] sm:$0xff]  ;;  %327 = vmatpush.bf16.msra.mxu0 %v627_v0  ;;  %v634_v5 = vld [vmem:[#allocation3 + $0x70] sm:$0xff]  ;;  %v625_v8 = vld [vmem:[#allocation3 + $0x28] sm:$0xff] }
   0x7   :  { %v643_v2 = vld [vmem:[#allocation3 + $0xb8] sm:$0xff]  ;;  %341 = vmatpush.bf16.msra.mxu1 %v635_v1  ;;  %v642_v6 = vld [vmem:[#allocation3 + $0xb0] sm:$0xff]  ;;  %v633_v9 = vld [vmem:[#allocation3 + $0x68] sm:$0xff] }
   0x8   :  { %v651_v3 = vld [vmem:[#allocation3 + $0xf8] sm:$0xff]  ;;  %355 = vmatpush.bf16.msra.mxu2 %v643_v2  ;;  %v650_v7 = vld [vmem:[#allocation3 + $0xf0] sm:$0xff]  ;;  %v641_v10 = vld [vmem:[#allocation3 + $0xa8] sm:$0xff]  ;;  %v703_v2 = vmov 128.0  }
   0x9   :  { %369 = vmatpush.bf16.msra.mxu3 %v651_v3  ;;  %v649_v11 = vld [vmem:[#allocation3 + $0xe8] sm:$0xff]  ;;  %v624_v12 = vld [vmem:[#allocation3 + $0x20] sm:$0xff]  ;;  %v623_v16 = vld [vmem:[#allocation3 + $0x18] sm:$0xff]  ;;  %668 = vrcp.f32 %v703_v2 }
   0xa   :  { %328 = vmatpush.bf16.msra.mxu0 %v626_v4  ;;  %v632_v13 = vld [vmem:[#allocation3 + $0x60] sm:$0xff]  ;;  %v631_v17 = vld [vmem:[#allocation3 + $0x58] sm:$0xff]  ;;  %v622_v20 = vld [vmem:[#allocation3 + $0x10] sm:$0xff] }
   0xb   :  { %342 = vmatpush.bf16.msra.mxu1 %v634_v5  ;;  %v640_v14 = vld [vmem:[#allocation3 + $0xa0] sm:$0xff]  ;;  %v639_v18 = vld [vmem:[#allocation3 + $0x98] sm:$0xff]  ;;  %v630_v21 = vld [vmem:[#allocation3 + $0x50] sm:$0xff] }
   0xc   :  { %356 = vmatpush.bf16.msra.mxu2 %v642_v6  ;;  %v648_v15 = vld [vmem:[#allocation3 + $0xe0] sm:$0xff]  ;;  %v647_v19 = vld [vmem:[#allocation3 + $0xd8] sm:$0xff]  ;;  %v638_v22 = vld [vmem:[#allocation3 + $0x90] sm:$0xff] }
   0xd   :  { %370 = vmatpush.bf16.msra.mxu3 %v650_v7  ;;  %v646_v23 = vld [vmem:[#allocation3 + $0xd0] sm:$0xff]  ;;  %v621_v24 = vld [vmem:[#allocation3 + $0x8] sm:$0xff]  ;;  %v620_v28 = vld [vmem:[#allocation3] sm:$0xff] }
   0xe   :  { %329 = vmatpush.bf16.msra.mxu0 %v625_v8  ;;  %v629_v25 = vld [vmem:[#allocation3 + $0x48] sm:$0xff]  ;;  %v628_v29 = vld [vmem:[#allocation3 + $0x40] sm:$0xff]  ;;  %v618_v33 = vld [vmem:[%s781_s0 + $0xc] sm:$0xf0] }
   0xf   :  { %343 = vmatpush.bf16.msra.mxu1 %v633_v9  ;;  %v637_v26 = vld [vmem:[#allocation3 + $0x88] sm:$0xff]  ;;  %v636_v30 = vld [vmem:[#allocation3 + $0x80] sm:$0xff]  ;;  %v476_v35 = vld [vmem:[%s781_s0 + $0x10] sm:$0xf0]  ;;  %v669_v3 = vpop.eup %668 }
  0x10   :  { %357 = vmatpush.bf16.msra.mxu2 %v641_v10  ;;  %v645_v27 = vld [vmem:[#allocation3 + $0xc8] sm:$0xff]  ;;  %v644_v31 = vld [vmem:[#allocation3 + $0xc0] sm:$0xff]  ;;  %v619_v37 = vld [vmem:[%s781_s0 + $0x14] sm:$0xf0]  ;;  %v409_v4 = vmul.f32 128.0, %v669_v3  ;;  %vm413_vm0 = vweird.f32 %v669_v3 }
  0x11   :  { %371 = vmatpush.bf16.msra.mxu3 %v649_v11  ;;  %v474_v32 = vld [vmem:[%s781_s0] sm:$0xf]  ;;  %v616_v34 = vld [vmem:[%s781_s0 + $0x4] sm:$0xf]  ;;  %v482_v36 = vld [vmem:[%s781_s0 + $0x8] sm:$0xf] }
  0x12   :  { %330 = vmatpush.bf16.msra.mxu0 %v624_v12  ;;  %v617_v38 = vld [vmem:[%s781_s0 + $0xc] sm:$0xf]  ;;  %v484_v39 = vld [vmem:[%s781_s0 + $0x18] sm:$0xf0]  ;;  %v475_v40 = vor.u32 %v618_v33, %v474_v32  ;;  %v479_v41 = vor.u32 %v616_v34, %v476_v35  ;;  %v483_v42 = vor.u32 %v619_v37, %v482_v36  ;;  %v653_v49 = vld [vmem:[%s784_s3] sm:$0xff]   ;;  %v410_v5 = vsub.f32 1.0, %v409_v4 }
  0x13   :  { %344 = vmatpush.bf16.msra.mxu1 %v632_v13  ;;  %v487_v43 = vor.u32 %v617_v38, %v484_v39  ;;  %v665_v51 = vld [vmem:[%s783_s2] ss:$0 sm:$0xff]  ;;  %v654_v53 = vunpack.c.l.bf16 %v653_v49  ;;  %v655_v63 = vunpack.c.h.bf16 %v653_v49 }
  0x14   :  { %358 = vmatpush.bf16.msra.mxu2 %v640_v14  ;;  %v411_v6 = vmul.f32 %v669_v3, %v410_v5  ;;  %v666_v35 = vld [vmem:[%s785_s4] ss:$0 sm:$0xff] }
  0x15   :  { %372 = vmatpush.bf16.msra.mxu3 %v648_v15  ;;  %v667_v39 = vld [vmem:[%s786_s5] ss:$0 sm:$0xff] }
  0x16   :  { %331 = vmatpush.bf16.msra.mxu0 %v623_v16  ;;  %v412_v7 = vadd.f32 %v669_v3, %v411_v6 }
  0x17   :  { %345 = vmatpush.bf16.msra.mxu1 %v631_v17 }
  0x18   :  { %359 = vmatpush.bf16.msra.mxu2 %v639_v18  ;;  %v414_v8 = vsel %vm413_vm0, %v669_v3, %v412_v7 }
  0x19   :  { %373 = vmatpush.bf16.msra.mxu3 %v647_v19 }
  0x1a   :  { %332 = vmatpush.bf16.msra.mxu0 %v622_v20 }
  0x1b   :  { %346 = vmatpush.bf16.msra.mxu1 %v630_v21 }
  0x1c   :  { %360 = vmatpush.bf16.msra.mxu2 %v638_v22 }
  0x1d   :  { %374 = vmatpush.bf16.msra.mxu3 %v646_v23 }
  0x1e   :  { %333 = vmatpush.bf16.msra.mxu0 %v621_v24 }
  0x1f   :  { %347 = vmatpush.bf16.msra.mxu1 %v629_v25 }
  0x20   :  { %361 = vmatpush.bf16.msra.mxu2 %v637_v26 }
  0x21   :  { %375 = vmatpush.bf16.msra.mxu3 %v645_v27 }
  0x22   :  { %334 = vmatpush.bf16.msra.mxu0 %v620_v28 }
  0x23   :  { %348 = vmatpush.bf16.msra.mxu1 %v628_v29 }
  0x24   :  { %362 = vmatpush.bf16.msra.mxu2 %v636_v30 }
  0x25   :  { %376 = vmatpush.bf16.msra.mxu3 %v644_v31  ;;  %335 = vmatmul.bf16.vlgmr.msra.gmra.mxu0 %v475_v40 }
  0x26   :  { %349 = vmatmul.bf16.vlgmr.msra.gmra.mxu1 %v479_v41 }
  0x27   :  { %363 = vmatmul.bf16.vlgmr.msra.gmra.mxu2 %v483_v42 }
  0x28   :  { %377 = vmatmul.bf16.vlgmr.msra.gmra.mxu3 %v487_v43 }
  0xa2   :  { %v336_v44 = vpop.f32.mrf.mxu0 }
  0xa3   :  { %v350_v45 = vpop.f32.mrf.mxu1 }
  0xa4   :  { %v351_v46 = vadd.f32 %v350_v45, %v336_v44 }
  0xaa   :  { %v364_v47 = vpop.f32.mrf.mxu2  ;;  %v338_v54 = vpop.f32.mrf.mxu0 }
  0xab   :  { %v378_v48 = vpop.f32.mrf.mxu3  ;;  %v365_v50 = vadd.f32 %v364_v47, %v351_v46  ;;  %v352_v55 = vpop.f32.mrf.mxu1 }
  0xac   :  { %v353_v57 = vadd.f32 %v352_v55, %v338_v54 }
  0xad   :  { %v379_v52 = vadd.f32 %v378_v48, %v365_v50 }
  0xaf   :  { %v396_v56 = vadd.f32 %v665_v51, %v379_v52 }
  0xb1   :  { %v402_v58 = vadd.f32 %v654_v53, %v396_v56 }
  0xb2   :  { %v366_v59 = vpop.f32.mrf.mxu2 }
  0xb3   :  { %v367_v60 = vadd.f32 %v366_v59, %v353_v57  ;;  %404 = vadd.xlane.f32.xlu0 %v402_v58  ;;  %v380_v61 = vpop.f32.mrf.mxu3 }
  0xb5   :  { %v381_v62 = vadd.f32 %v380_v61, %v367_v60 }
  0xb7   :  { %v397_v0 = vadd.f32 %v665_v51, %v381_v62 }
  0xb9   :  { %v403_v1 = vadd.f32 %v655_v63, %v397_v0 }
  0xbb   :  { %406 = vadd.xlane.f32.xlu0 %v403_v1 }
 0x126   :  { %v405_v9 = vpop.xlane.xlu0 %404 }
 0x127   :  { %v415_v10 = vmul.f32 %v414_v8, %v405_v9 }
 0x129   :  { %v417_v11 = vsub.f32 %v402_v58, %v415_v10 }
 0x12b   :  { %v419_v12 = vmul.f32 %v417_v11, %v417_v11 }
 0x12d   :  { %421 = vadd.xlane.f32.xlu1 %v419_v12 }
 0x12e   :  { %v407_v13 = vpop.xlane.xlu0 %406 }
 0x12f   :  { %v416_v14 = vmul.f32 %v414_v8, %v407_v13 }
 0x131   :  { %v418_v15 = vsub.f32 %v403_v1, %v416_v14 }
 0x133   :  { %v420_v16 = vmul.f32 %v418_v15, %v418_v15 }
 0x135   :  { %423 = vadd.xlane.f32.xlu1 %v420_v16 }
 0x1a0   :  { %v422_v17 = vpop.xlane.xlu1 %421 }
 0x1a1   :  { %v425_v18 = vmul.f32 %v422_v17, %v414_v8 }
 0x1a3   :  { %v427_v19 = vadd.f32 1e-12, %v425_v18 }
 0x1a5   :  { %670 = vrsqrt.f32 %v427_v19  ;;  %vm435_vm2 = vweird.f32 %v427_v19 }
 0x1a8   :  { %v424_v20 = vpop.xlane.xlu1 %423 }
 0x1a9   :  { %v426_v21 = vmul.f32 %v424_v20, %v414_v8 }
 0x1ab   :  { %v671_v22 = vpop.eup %670  ;;  %v428_v23 = vadd.f32 1e-12, %v426_v21 }
 0x1ac   :  { %v430_v24 = vmul.f32 %v671_v22, %v427_v19  ;;  %vm436_vm1 = vweird.f32 %v671_v22 }
 0x1ad   :  { %672 = vrsqrt.f32 %v428_v23  ;;  %vm437_vm3 = vmor %vm435_vm2, %vm436_vm1  ;;  %vm445_vm5 = vweird.f32 %v428_v23 }
 0x1ae   :  { %v431_v25 = vmul.f32 %v671_v22, %v430_v24 }
 0x1b0   :  { %v432_v26 = vmul.f32 0.5, %v431_v25 }
 0x1b2   :  { %v433_v27 = vsub.f32 1.5, %v432_v26 }
 0x1b3   :  { %v673_v28 = vpop.eup %672 }
 0x1b4   :  { %v434_v29 = vmul.f32 %v671_v22, %v433_v27  ;;  %v440_v30 = vmul.f32 %v673_v28, %v428_v23  ;;  %vm446_vm4 = vweird.f32 %v673_v28 }
 0x1b5   :  { %vm447_vm6 = vmor %vm445_vm5, %vm446_vm4 }
 0x1b6   :  { %v441_v31 = vmul.f32 %v673_v28, %v440_v30  ;;  %v438_v32 = vsel %vm437_vm3, %v671_v22, %v434_v29 }
 0x1b7   :  { %v449_v36 = vmul.f32 %v438_v32, %v417_v11 }
 0x1b8   :  { %v442_v33 = vmul.f32 0.5, %v441_v31 }
 0x1b9   :  { %v455_v40 = vmul.f32 %v666_v35, %v449_v36 }
 0x1ba   :  { %v443_v34 = vsub.f32 1.5, %v442_v33 }
 0x1bb   :  { %v461_v43 = vadd.f32 %v667_v39, %v455_v40 }
 0x1bc   :  { %v444_v37 = vmul.f32 %v673_v28, %v443_v34 }
 0x1be   :  { %v448_v38 = vsel %vm447_vm6, %v673_v28, %v444_v37 }
 0x1bf   :  { %v450_v41 = vmul.f32 %v448_v38, %v418_v15 }
 0x1c1   :  { %v456_v42 = vmul.f32 %v666_v35, %v450_v41 }
 0x1c3   :  { %v462_v44 = vadd.f32 %v667_v39, %v456_v42 }
 0x1c5   :  { %v659_v45 = vpack.c.bf16 %v462_v44, %v461_v43 }
 0x1c7   :  { %660 = vst [vmem:[%s787_s6] sm:$0xff] %v659_v45  }
 0x1c8   :  { %471 = vsyncpa [#allocation4], 1 }

</bundles_post_ra>
